<compile_context>
chip_gen: v6e
topology: v6e:2x2x1
jax: 0.10.0
libtpu: 0.0.40
codegen_flags: <defaults>
</compile_context>

<pallas_src>
import functools

import jax
import jax.numpy as jnp
from jax import lax
from jax.experimental import pallas as pl
from jax.experimental.pallas import tpu as pltpu

_LN_EPS = 1e-5  # PyTorch nn.LayerNorm default (deiqt uses default norm_layer).
# TODO(synk): DeiT-style configs sometimes use eps=1e-6; eps is threaded through
# the wrapper so it can be changed to match the real model config.


def _gelu_tanh(v):
    # tanh approximation of GELU (tanh -> EUP).  PyTorch nn.GELU defaults to the
    # exact erf form; max abs deviation ~3e-4, further masked by the 1e-4 LayerScale.
    # TODO(synk): switch to exact erf-based GELU if strict parity is required.
    c = 0.7978845608028654  # sqrt(2/pi)
    return 0.5 * v * (1.0 + jnp.tanh(c * (v + 0.044715 * v * v * v)))


def _layernorm(v, w, b, eps):
    mu = jnp.mean(v, axis=-1, keepdims=True)
    xc = v - mu
    var = jnp.mean(xc * xc, axis=-1, keepdims=True)
    return xc * lax.rsqrt(var + eps) * w + b


def _block_kernel(x_ref,
                  ln1w_ref, ln1b_ref,
                  wqkv_ref, bqkv_ref,
                  wproj_ref, bproj_ref, g1_ref,
                  ln2w_ref, ln2b_ref,
                  wfc1_ref, bfc1_ref, wfc2_ref, bfc2_ref, g2_ref,
                  o_ref, *, num_heads, eps):
    x = x_ref[0].astype(jnp.float32)            # [N, D]
    n, d = x.shape
    hd = d // num_heads
    mxu_dt = wqkv_ref.dtype                     # matmul operand dtype (f32 or bf16)

    # ---------------- attention branch ----------------
    h = _layernorm(x, ln1w_ref[...], ln1b_ref[...], eps)
    qkv = jnp.dot(h.astype(mxu_dt), wqkv_ref[...],
                  preferred_element_type=jnp.float32)
    qkv = qkv + bqkv_ref[...]                   # [N, 3D]; qk scale pre-folded
    # 128-aligned lane slices (D is a multiple of 128 in practice).
    q = qkv[:, 0:d]
    k = qkv[:, d:2 * d]
    v = qkv[:, 2 * d:3 * d]

    # Head-batched attention: [H, N, hd] operands, two batched MXU matmuls.
    qh = jnp.transpose(q.reshape(n, num_heads, hd), (1, 0, 2)).astype(mxu_dt)
    kh = jnp.transpose(k.reshape(n, num_heads, hd), (1, 0, 2)).astype(mxu_dt)
    vh = jnp.transpose(v.reshape(n, num_heads, hd), (1, 0, 2)).astype(mxu_dt)

    s = jnp.einsum("hqd,hkd->hqk", qh, kh,
                   preferred_element_type=jnp.float32)        # [H, N, N]
    s = s - jnp.max(s, axis=-1, keepdims=True)
    p = jnp.exp(s)
    p = p * pl.reciprocal(jnp.sum(p, axis=-1, keepdims=True), approx=True)
    oh = jnp.einsum("hqk,hkd->hqd", p.astype(mxu_dt), vh,
                    preferred_element_type=jnp.float32)       # [H, N, hd]
    attn = jnp.transpose(oh, (1, 0, 2)).reshape(n, d)         # [N, D]

    proj = jnp.dot(attn.astype(mxu_dt), wproj_ref[...],
                   preferred_element_type=jnp.float32) + bproj_ref[...]
    x1 = x + g1_ref[...] * proj                 # LayerScale residual 1

    # ---------------- MLP branch ----------------
    h2 = _layernorm(x1, ln2w_ref[...], ln2b_ref[...], eps)
    f = jnp.dot(h2.astype(mxu_dt), wfc1_ref[...],
                preferred_element_type=jnp.float32) + bfc1_ref[...]
    f = _gelu_tanh(f)
    f = jnp.dot(f.astype(mxu_dt), wfc2_ref[...],
                preferred_element_type=jnp.float32) + bfc2_ref[...]
    out = x1 + g2_ref[...] * f                  # LayerScale residual 2

    o_ref[0] = out.astype(o_ref.dtype)


def layer_scale_init_block(x, params, *, num_heads, qk_scale=None,
                           eps=_LN_EPS, weight_dtype=None):
    """x: [B, N, D].  Matmul weights are stored [in, out] (already transposed
    from PyTorch's nn.Linear [out, in]); 1-D params are reshaped to (1, dim).
    weight_dtype=jnp.bfloat16 is recommended for production on v6e/v7x."""
    B, N, D = x.shape
    assert D % num_heads == 0
    hd = D // num_heads
    scale = qk_scale if qk_scale is not None else hd ** (-0.5)
    Hm = params["w_fc1"].shape[1]

    # Fold the qk scale into the q columns of the qkv projection (one-time,
    # outside the hot path) so the kernel never multiplies q by scale.
    col_scale = jnp.concatenate([
        jnp.full((D,), scale, jnp.float32), jnp.ones((2 * D,), jnp.float32)])
    w_qkv = params["w_qkv"].astype(jnp.float32) * col_scale[None, :]
    b_qkv = params["b_qkv"].astype(jnp.float32) * col_scale

    wdt = weight_dtype if weight_dtype is not None else jnp.float32
    mat = lambda a: a.astype(wdt)               # big matmul weights only
    row = lambda a: a.reshape(1, -1).astype(jnp.float32)

    ins = (
        x,
        row(params["ln1_w"]), row(params["ln1_b"]),
        mat(w_qkv), row(b_qkv),
        mat(params["w_proj"]), row(params["b_proj"]), row(params["gamma_1"]),
        row(params["ln2_w"]), row(params["ln2_b"]),
        mat(params["w_fc1"]), row(params["b_fc1"]),
        mat(params["w_fc2"]), row(params["b_fc2"]), row(params["gamma_2"]),
    )

    def const2d(shp):
        # Constant block index -> weight DMA'd once, VMEM-resident across steps.
        # Single-buffered: no point double-buffering a block that never changes.
        return pl.BlockSpec(shp, lambda b: (0, 0), pipeline_mode=pl.Buffered(1))

    in_specs = [
        pl.BlockSpec((1, N, D), lambda b: (b, 0, 0)),       # x: one batch / step
        const2d((1, D)), const2d((1, D)),                   # LN1 w, b
        const2d((D, 3 * D)), const2d((1, 3 * D)),           # qkv
        const2d((D, D)), const2d((1, D)), const2d((1, D)),  # proj w, b, gamma_1
        const2d((1, D)), const2d((1, D)),                   # LN2 w, b
        const2d((D, Hm)), const2d((1, Hm)),                 # fc1
        const2d((Hm, D)), const2d((1, D)), const2d((1, D)), # fc2, gamma_2
    ]

    # --- VMEM budget derived from the actual footprint (not a flat number) ---
    weight_bytes = sum(int(a.size) * a.dtype.itemsize for a in ins[1:])  # 1x buffered
    io_bytes = 2 * (2 * N * D) * x.dtype.itemsize                        # 2x-buffered x+out
    interm_bytes = 4 * (N * 3 * D + num_heads * N * N + N * Hm + 4 * N * D)
    vmem_limit = int(min(100 << 20,
                         max(8 << 20, 2 * (weight_bytes + io_bytes + interm_bytes))))

    # --- Cost estimate so XLA can schedule around the custom call ---
    flops = 2 * B * N * (3 * D * D            # qkv
                         + 2 * N * D          # scores + p@v
                         + D * D              # proj
                         + 2 * D * Hm)        # fc1 + fc2
    transcendentals = B * (num_heads * N * N + N * Hm)     # exp + tanh
    bytes_accessed = (2 * B * N * D * x.dtype.itemsize
                      + weight_bytes)
    cost = pl.CostEstimate(flops=flops, transcendentals=transcendentals,
                           bytes_accessed=bytes_accessed)

    kernel = functools.partial(_block_kernel, num_heads=num_heads, eps=eps)
    return pl.pallas_call(
        kernel,
        out_shape=jax.ShapeDtypeStruct((B, N, D), x.dtype),
        grid_spec=pltpu.PrefetchScalarGridSpec(
            num_scalar_prefetch=0,
            grid=(B,),
            in_specs=in_specs,
            out_specs=pl.BlockSpec((1, N, D), lambda b: (b, 0, 0)),
        ),
        compiler_params=pltpu.CompilerParams(
            dimension_semantics=("parallel",),   # megacore sharding on v7x
            vmem_limit_bytes=vmem_limit,
        ),
        cost_estimate=cost,
    )(*ins)


def _reference(x, p, *, num_heads, qk_scale=None, eps=_LN_EPS):
    # Pure-JAX reference mirroring the PyTorch forward (eval mode, drops = 0),
    # using the ORIGINAL (unfolded) parameters -> validates the scale folding.
    B, N, D = x.shape
    hd = D // num_heads
    scale = qk_scale if qk_scale is not None else hd ** (-0.5)

    def ln(v, w, b):
        mu = v.mean(-1, keepdims=True)
        var = ((v - mu) ** 2).mean(-1, keepdims=True)
        return (v - mu) / jnp.sqrt(var + eps) * w + b

    h = ln(x, p["ln1_w"], p["ln1_b"])
    qkv = h @ p["w_qkv"] + p["b_qkv"]
    qkv = qkv.reshape(B, N, 3, num_heads, hd).transpose(2, 0, 3, 1, 4)
    q, k, v = qkv[0] * scale, qkv[1], qkv[2]
    a = jax.nn.softmax(jnp.einsum("bhqd,bhkd->bhqk", q, k), axis=-1)
    o = jnp.einsum("bhqk,bhkd->bhqd", a, v).transpose(0, 2, 1, 3).reshape(B, N, D)
    o = o @ p["w_proj"] + p["b_proj"]
    x1 = x + p["gamma_1"] * o
    h2 = ln(x1, p["ln2_w"], p["ln2_b"])
    f = _gelu_tanh(h2 @ p["w_fc1"] + p["b_fc1"])
    f = f @ p["w_fc2"] + p["b_fc2"]
    return x1 + p["gamma_2"] * f


if __name__ == "__main__":
    key = jax.random.PRNGKey(0)
    B, N, D = 2, 16, 128          # small; D multiple of 128 -> lane-dense stores
    num_heads = 2                 # head_dim = 64
    Hm = 4 * D                    # mlp_ratio = 4.0

    ks = jax.random.split(key, 16)
    rnd = lambda k, shp, s=0.02: jax.random.normal(k, shp, jnp.float32) * s

    x = jax.random.normal(ks[0], (B, N, D), dtype=jnp.float32)
    params = dict(
        ln1_w=1.0 + rnd(ks[1], (D,), 0.1),
        ln1_b=rnd(ks[2], (D,), 0.1),
        # PyTorch nn.Linear stores weight [out, in]; kernel takes [in, out].
        w_qkv=rnd(ks[3], (D, 3 * D)),
        b_qkv=jnp.zeros((3 * D,), jnp.float32),     # qkv_bias=False (module default)
        w_proj=rnd(ks[4], (D, D)),
        b_proj=rnd(ks[5], (D,)),
        # LayerScale gammas are learnable (module inits to 1e-4*ones); random
        # values here keep the check sensitive to both branches.
        gamma_1=rnd(ks[6], (D,), 0.1),
        ln2_w=1.0 + rnd(ks[7], (D,), 0.1),
        ln2_b=rnd(ks[8], (D,), 0.1),
        w_fc1=rnd(ks[9], (D, Hm)),
        b_fc1=rnd(ks[10], (Hm,)),
        w_fc2=rnd(ks[11], (Hm, D)),
        b_fc2=rnd(ks[12], (D,)),
        gamma_2=rnd(ks[13], (D,), 0.1),
    )

    # f32 weights here for a tight correctness check; use weight_dtype=jnp.bfloat16
    # in production on v6e/v7x (halves weight DMA/VMEM, ~2x MXU throughput).
    y = layer_scale_init_block(x, params, num_heads=num_heads)
    y = jax.block_until_ready(y)

    y_ref = _reference(x, params, num_heads=num_heads)
    assert y.shape == (B, N, D)
    assert jnp.allclose(y, y_ref, atol=2e-3, rtol=2e-3), float(
        jnp.max(jnp.abs(y - y_ref)))

    print("KERNEL_OK")
</pallas_src>

<mosaic_0001>
module attributes {stable_mosaic.version = 11 : i64} {
  func.func @_block_kernel(%arg0: i32, %arg1: memref<1x16x128xf32, #tpu.memory_space<vmem>>, %arg2: memref<1x128xf32, #tpu.memory_space<vmem>>, %arg3: memref<1x128xf32, #tpu.memory_space<vmem>>, %arg4: memref<128x384xf32, #tpu.memory_space<vmem>>, %arg5: memref<1x384xf32, #tpu.memory_space<vmem>>, %arg6: memref<128x128xf32, #tpu.memory_space<vmem>>, %arg7: memref<1x128xf32, #tpu.memory_space<vmem>>, %arg8: memref<1x128xf32, #tpu.memory_space<vmem>>, %arg9: memref<1x128xf32, #tpu.memory_space<vmem>>, %arg10: memref<1x128xf32, #tpu.memory_space<vmem>>, %arg11: memref<128x512xf32, #tpu.memory_space<vmem>>, %arg12: memref<1x512xf32, #tpu.memory_space<vmem>>, %arg13: memref<512x128xf32, #tpu.memory_space<vmem>>, %arg14: memref<1x128xf32, #tpu.memory_space<vmem>>, %arg15: memref<1x128xf32, #tpu.memory_space<vmem>>, %arg16: memref<1x16x128xf32, #tpu.memory_space<vmem>>) attributes {dimension_semantics = [#tpu.dimension_semantics<parallel>], iteration_bounds = array<i64: 2>, scalar_prefetch = 0 : i64, scratch_operands = 0 : i64, tpu.core_type = #tpu.core_type<tc>, window_params = [{transform_indices = @transform_0, window_bounds = array<i64: 1, 16, 128>}, {pipeline_mode = #tpu.pipeline_mode<synchronous>, transform_indices = @transform_1, window_bounds = array<i64: 1, 128>}, {pipeline_mode = #tpu.pipeline_mode<synchronous>, transform_indices = @transform_2, window_bounds = array<i64: 1, 128>}, {pipeline_mode = #tpu.pipeline_mode<synchronous>, transform_indices = @transform_3, window_bounds = array<i64: 128, 384>}, {pipeline_mode = #tpu.pipeline_mode<synchronous>, transform_indices = @transform_4, window_bounds = array<i64: 1, 384>}, {pipeline_mode = #tpu.pipeline_mode<synchronous>, transform_indices = @transform_5, window_bounds = array<i64: 128, 128>}, {pipeline_mode = #tpu.pipeline_mode<synchronous>, transform_indices = @transform_6, window_bounds = array<i64: 1, 128>}, {pipeline_mode = #tpu.pipeline_mode<synchronous>, transform_indices = @transform_7, window_bounds = array<i64: 1, 128>}, {pipeline_mode = #tpu.pipeline_mode<synchronous>, transform_indices = @transform_8, window_bounds = array<i64: 1, 128>}, {pipeline_mode = #tpu.pipeline_mode<synchronous>, transform_indices = @transform_9, window_bounds = array<i64: 1, 128>}, {pipeline_mode = #tpu.pipeline_mode<synchronous>, transform_indices = @transform_10, window_bounds = array<i64: 128, 512>}, {pipeline_mode = #tpu.pipeline_mode<synchronous>, transform_indices = @transform_11, window_bounds = array<i64: 1, 512>}, {pipeline_mode = #tpu.pipeline_mode<synchronous>, transform_indices = @transform_12, window_bounds = array<i64: 512, 128>}, {pipeline_mode = #tpu.pipeline_mode<synchronous>, transform_indices = @transform_13, window_bounds = array<i64: 1, 128>}, {pipeline_mode = #tpu.pipeline_mode<synchronous>, transform_indices = @transform_14, window_bounds = array<i64: 1, 128>}, {transform_indices = @transform_15, window_bounds = array<i64: 1, 16, 128>}]} {
    %c0 = arith.constant 0 : index
    %c0_0 = arith.constant 0 : index
    %c0_1 = arith.constant 0 : index
    %0 = vector.load %arg1[%c0, %c0_0, %c0_1] : memref<1x16x128xf32, #tpu.memory_space<vmem>>, vector<1x16x128xf32>
    %1 = vector.shape_cast %0 : vector<1x16x128xf32> to vector<16x128xf32>
    %c0_2 = arith.constant 0 : index
    %c0_3 = arith.constant 0 : index
    %2 = vector.load %arg2[%c0_2, %c0_3] : memref<1x128xf32, #tpu.memory_space<vmem>>, vector<1x128xf32>
    %c0_4 = arith.constant 0 : index
    %c0_5 = arith.constant 0 : index
    %3 = vector.load %arg3[%c0_4, %c0_5] : memref<1x128xf32, #tpu.memory_space<vmem>>, vector<1x128xf32>
    %cst = arith.constant dense<0.000000e+00> : vector<16xf32>
    %4 = vector.multi_reduction <add>, %1, %cst [1] : vector<16x128xf32> to vector<16xf32>
    %5 = vector.shape_cast %4 : vector<16xf32> to vector<16x1xf32>
    %cst_6 = arith.constant 1.280000e+02 : f32
    %6 = vector.broadcast %cst_6 : f32 to vector<16x1xf32>
    %7 = arith.divf %5, %6 : vector<16x1xf32>
    %8 = vector.broadcast %7 : vector<16x1xf32> to vector<16x128xf32>
    %9 = arith.subf %1, %8 : vector<16x128xf32>
    %10 = arith.mulf %9, %9 : vector<16x128xf32>
    %cst_7 = arith.constant dense<0.000000e+00> : vector<16xf32>
    %11 = vector.multi_reduction <add>, %10, %cst_7 [1] : vector<16x128xf32> to vector<16xf32>
    %12 = vector.shape_cast %11 : vector<16xf32> to vector<16x1xf32>
    %cst_8 = arith.constant 1.280000e+02 : f32
    %13 = vector.broadcast %cst_8 : f32 to vector<16x1xf32>
    %14 = arith.divf %12, %13 : vector<16x1xf32>
    %cst_9 = arith.constant 9.99999974E-6 : f32
    %15 = vector.broadcast %cst_9 : f32 to vector<16x1xf32>
    %16 = arith.addf %14, %15 : vector<16x1xf32>
    %17 = math.rsqrt %16 : vector<16x1xf32>
    %18 = vector.broadcast %17 : vector<16x1xf32> to vector<16x128xf32>
    %19 = arith.mulf %9, %18 : vector<16x128xf32>
    %20 = vector.broadcast %2 : vector<1x128xf32> to vector<16x128xf32>
    %21 = arith.mulf %19, %20 : vector<16x128xf32>
    %22 = vector.broadcast %3 : vector<1x128xf32> to vector<16x128xf32>
    %23 = arith.addf %21, %22 : vector<16x128xf32>
    %c0_10 = arith.constant 0 : index
    %c0_11 = arith.constant 0 : index
    %24 = vector.load %arg4[%c0_10, %c0_11] : memref<128x384xf32, #tpu.memory_space<vmem>>, vector<128x384xf32>
    %cst_12 = arith.constant dense<0.000000e+00> : vector<16x384xf32>
    %25 = tpu.matmul %23, %24, %cst_12 {dimension_numbers = #tpu.dot_dimension_numbers<[1], [0], [0], [1], [0, 0, 1, 1], [], []>} : vector<16x128xf32>, vector<128x384xf32>, vector<16x384xf32> -> vector<16x384xf32>
    %c0_13 = arith.constant 0 : index
    %c0_14 = arith.constant 0 : index
    %26 = vector.load %arg5[%c0_13, %c0_14] : memref<1x384xf32, #tpu.memory_space<vmem>>, vector<1x384xf32>
    %27 = vector.broadcast %26 : vector<1x384xf32> to vector<16x384xf32>
    %28 = arith.addf %25, %27 : vector<16x384xf32>
    %29 = vector.extract_strided_slice %28 {offsets = [0, 0], sizes = [16, 128], strides = [1, 1]} : vector<16x384xf32> to vector<16x128xf32>
    %30 = vector.extract_strided_slice %28 {offsets = [0, 128], sizes = [16, 128], strides = [1, 1]} : vector<16x384xf32> to vector<16x128xf32>
    %31 = vector.extract_strided_slice %28 {offsets = [0, 256], sizes = [16, 128], strides = [1, 1]} : vector<16x384xf32> to vector<16x128xf32>
    %32 = vector.shape_cast %29 : vector<16x128xf32> to vector<16x2x64xf32>
    %33 = tpu.transpose %32, [1, 0, 2] : vector<16x2x64xf32> -> vector<2x16x64xf32>
    %34 = vector.shape_cast %30 : vector<16x128xf32> to vector<16x2x64xf32>
    %35 = tpu.transpose %34, [1, 0, 2] : vector<16x2x64xf32> -> vector<2x16x64xf32>
    %36 = vector.shape_cast %31 : vector<16x128xf32> to vector<16x2x64xf32>
    %37 = tpu.transpose %36, [1, 0, 2] : vector<16x2x64xf32> -> vector<2x16x64xf32>
    "tpu.trace_start"() <{level = 10 : i32, message = "hqd,hkd->hqk"}> : () -> ()
    %cst_15 = arith.constant dense<0.000000e+00> : vector<2x16x16xf32>
    %38 = tpu.matmul %33, %35, %cst_15 {dimension_numbers = #tpu.dot_dimension_numbers<[2], [2], [1], [1], [0, 0, 0, 1, 1, 1], [0], [0]>} : vector<2x16x64xf32>, vector<2x16x64xf32>, vector<2x16x16xf32> -> vector<2x16x16xf32>
    "tpu.trace_stop"() : () -> ()
    %cst_16 = arith.constant dense<0xFF800000> : vector<2x16xf32>
    %39 = vector.multi_reduction <maximumf>, %38, %cst_16 [2] : vector<2x16x16xf32> to vector<2x16xf32>
    %40 = vector.shape_cast %39 : vector<2x16xf32> to vector<2x16x1xf32>
    %41 = vector.broadcast %40 : vector<2x16x1xf32> to vector<2x16x16xf32>
    %42 = arith.subf %38, %41 : vector<2x16x16xf32>
    %43 = math.exp %42 : vector<2x16x16xf32>
    %cst_17 = arith.constant dense<0.000000e+00> : vector<2x16xf32>
    %44 = vector.multi_reduction <add>, %43, %cst_17 [2] : vector<2x16x16xf32> to vector<2x16xf32>
    %45 = vector.shape_cast %44 : vector<2x16xf32> to vector<2x16x1xf32>
    %46 = tpu.reciprocal %45 {approx = true} : vector<2x16x1xf32> -> vector<2x16x1xf32>
    %47 = vector.broadcast %46 : vector<2x16x1xf32> to vector<2x16x16xf32>
    %48 = arith.mulf %43, %47 : vector<2x16x16xf32>
    "tpu.trace_start"() <{level = 10 : i32, message = "hqk,hkd->hqd"}> : () -> ()
    %cst_18 = arith.constant dense<0.000000e+00> : vector<2x16x64xf32>
    %49 = tpu.matmul %48, %37, %cst_18 {dimension_numbers = #tpu.dot_dimension_numbers<[2], [1], [1], [2], [0, 0, 0, 1, 1, 2], [0], [0]>} : vector<2x16x16xf32>, vector<2x16x64xf32>, vector<2x16x64xf32> -> vector<2x16x64xf32>
    "tpu.trace_stop"() : () -> ()
    %50 = tpu.transpose %49, [1, 0, 2] : vector<2x16x64xf32> -> vector<16x2x64xf32>
    %51 = vector.shape_cast %50 : vector<16x2x64xf32> to vector<16x128xf32>
    %c0_19 = arith.constant 0 : index
    %c0_20 = arith.constant 0 : index
    %52 = vector.load %arg6[%c0_19, %c0_20] : memref<128x128xf32, #tpu.memory_space<vmem>>, vector<128x128xf32>
    %cst_21 = arith.constant dense<0.000000e+00> : vector<16x128xf32>
    %53 = tpu.matmul %51, %52, %cst_21 {dimension_numbers = #tpu.dot_dimension_numbers<[1], [0], [0], [1], [0, 0, 1, 1], [], []>} : vector<16x128xf32>, vector<128x128xf32>, vector<16x128xf32> -> vector<16x128xf32>
    %c0_22 = arith.constant 0 : index
    %c0_23 = arith.constant 0 : index
    %54 = vector.load %arg7[%c0_22, %c0_23] : memref<1x128xf32, #tpu.memory_space<vmem>>, vector<1x128xf32>
    %55 = vector.broadcast %54 : vector<1x128xf32> to vector<16x128xf32>
    %56 = arith.addf %53, %55 : vector<16x128xf32>
    %c0_24 = arith.constant 0 : index
    %c0_25 = arith.constant 0 : index
    %57 = vector.load %arg8[%c0_24, %c0_25] : memref<1x128xf32, #tpu.memory_space<vmem>>, vector<1x128xf32>
    %58 = vector.broadcast %57 : vector<1x128xf32> to vector<16x128xf32>
    %59 = arith.mulf %58, %56 : vector<16x128xf32>
    %60 = arith.addf %1, %59 : vector<16x128xf32>
    %c0_26 = arith.constant 0 : index
    %c0_27 = arith.constant 0 : index
    %61 = vector.load %arg9[%c0_26, %c0_27] : memref<1x128xf32, #tpu.memory_space<vmem>>, vector<1x128xf32>
    %c0_28 = arith.constant 0 : index
    %c0_29 = arith.constant 0 : index
    %62 = vector.load %arg10[%c0_28, %c0_29] : memref<1x128xf32, #tpu.memory_space<vmem>>, vector<1x128xf32>
    %cst_30 = arith.constant dense<0.000000e+00> : vector<16xf32>
    %63 = vector.multi_reduction <add>, %60, %cst_30 [1] : vector<16x128xf32> to vector<16xf32>
    %64 = vector.shape_cast %63 : vector<16xf32> to vector<16x1xf32>
    %cst_31 = arith.constant 1.280000e+02 : f32
    %65 = vector.broadcast %cst_31 : f32 to vector<16x1xf32>
    %66 = arith.divf %64, %65 : vector<16x1xf32>
    %67 = vector.broadcast %66 : vector<16x1xf32> to vector<16x128xf32>
    %68 = arith.subf %60, %67 : vector<16x128xf32>
    %69 = arith.mulf %68, %68 : vector<16x128xf32>
    %cst_32 = arith.constant dense<0.000000e+00> : vector<16xf32>
    %70 = vector.multi_reduction <add>, %69, %cst_32 [1] : vector<16x128xf32> to vector<16xf32>
    %71 = vector.shape_cast %70 : vector<16xf32> to vector<16x1xf32>
    %cst_33 = arith.constant 1.280000e+02 : f32
    %72 = vector.broadcast %cst_33 : f32 to vector<16x1xf32>
    %73 = arith.divf %71, %72 : vector<16x1xf32>
    %cst_34 = arith.constant 9.99999974E-6 : f32
    %74 = vector.broadcast %cst_34 : f32 to vector<16x1xf32>
    %75 = arith.addf %73, %74 : vector<16x1xf32>
    %76 = math.rsqrt %75 : vector<16x1xf32>
    %77 = vector.broadcast %76 : vector<16x1xf32> to vector<16x128xf32>
    %78 = arith.mulf %68, %77 : vector<16x128xf32>
    %79 = vector.broadcast %61 : vector<1x128xf32> to vector<16x128xf32>
    %80 = arith.mulf %78, %79 : vector<16x128xf32>
    %81 = vector.broadcast %62 : vector<1x128xf32> to vector<16x128xf32>
    %82 = arith.addf %80, %81 : vector<16x128xf32>
    %c0_35 = arith.constant 0 : index
    %c0_36 = arith.constant 0 : index
    %83 = vector.load %arg11[%c0_35, %c0_36] : memref<128x512xf32, #tpu.memory_space<vmem>>, vector<128x512xf32>
    %cst_37 = arith.constant dense<0.000000e+00> : vector<16x512xf32>
    %84 = tpu.matmul %82, %83, %cst_37 {dimension_numbers = #tpu.dot_dimension_numbers<[1], [0], [0], [1], [0, 0, 1, 1], [], []>} : vector<16x128xf32>, vector<128x512xf32>, vector<16x512xf32> -> vector<16x512xf32>
    %c0_38 = arith.constant 0 : index
    %c0_39 = arith.constant 0 : index
    %85 = vector.load %arg12[%c0_38, %c0_39] : memref<1x512xf32, #tpu.memory_space<vmem>>, vector<1x512xf32>
    %86 = vector.broadcast %85 : vector<1x512xf32> to vector<16x512xf32>
    %87 = arith.addf %84, %86 : vector<16x512xf32>
    %cst_40 = arith.constant 5.000000e-01 : f32
    %88 = vector.broadcast %cst_40 : f32 to vector<16x512xf32>
    %89 = arith.mulf %88, %87 : vector<16x512xf32>
    %cst_41 = arith.constant 4.471500e-02 : f32
    %90 = vector.broadcast %cst_41 : f32 to vector<16x512xf32>
    %91 = arith.mulf %90, %87 : vector<16x512xf32>
    %92 = arith.mulf %91, %87 : vector<16x512xf32>
    %93 = arith.mulf %92, %87 : vector<16x512xf32>
    %94 = arith.addf %87, %93 : vector<16x512xf32>
    %cst_42 = arith.constant 0.797884583 : f32
    %95 = vector.broadcast %cst_42 : f32 to vector<16x512xf32>
    %96 = arith.mulf %95, %94 : vector<16x512xf32>
    %97 = math.tanh %96 : vector<16x512xf32>
    %cst_43 = arith.constant 1.000000e+00 : f32
    %98 = vector.broadcast %cst_43 : f32 to vector<16x512xf32>
    %99 = arith.addf %98, %97 : vector<16x512xf32>
    %100 = arith.mulf %89, %99 : vector<16x512xf32>
    %c0_44 = arith.constant 0 : index
    %c0_45 = arith.constant 0 : index
    %101 = vector.load %arg13[%c0_44, %c0_45] : memref<512x128xf32, #tpu.memory_space<vmem>>, vector<512x128xf32>
    %cst_46 = arith.constant dense<0.000000e+00> : vector<16x128xf32>
    %102 = tpu.matmul %100, %101, %cst_46 {dimension_numbers = #tpu.dot_dimension_numbers<[1], [0], [0], [1], [0, 0, 1, 1], [], []>} : vector<16x512xf32>, vector<512x128xf32>, vector<16x128xf32> -> vector<16x128xf32>
    %c0_47 = arith.constant 0 : index
    %c0_48 = arith.constant 0 : index
    %103 = vector.load %arg14[%c0_47, %c0_48] : memref<1x128xf32, #tpu.memory_space<vmem>>, vector<1x128xf32>
    %104 = vector.broadcast %103 : vector<1x128xf32> to vector<16x128xf32>
    %105 = arith.addf %102, %104 : vector<16x128xf32>
    %c0_49 = arith.constant 0 : index
    %c0_50 = arith.constant 0 : index
    %106 = vector.load %arg15[%c0_49, %c0_50] : memref<1x128xf32, #tpu.memory_space<vmem>>, vector<1x128xf32>
    %107 = vector.broadcast %106 : vector<1x128xf32> to vector<16x128xf32>
    %108 = arith.mulf %107, %105 : vector<16x128xf32>
    %109 = arith.addf %60, %108 : vector<16x128xf32>
    %c0_51 = arith.constant 0 : index
    %c0_52 = arith.constant 0 : index
    %c0_53 = arith.constant 0 : index
    %110 = vector.load %arg16[%c0_51, %c0_52, %c0_53] : memref<1x16x128xf32, #tpu.memory_space<vmem>>, vector<1x16x128xf32>
    %111 = vector.shape_cast %110 : vector<1x16x128xf32> to vector<16x128xf32>
    %112 = vector.shape_cast %109 : vector<16x128xf32> to vector<1x16x128xf32>
    tpu.vector_store %arg16[%c0_51, %c0_52, %c0_53], %112 {strides = array<i32>} : memref<1x16x128xf32, #tpu.memory_space<vmem>>, vector<1x16x128xf32>,
    return
  }
  func.func @transform_0(%arg0: i32) -> (i32, i32, i32) {
    %c0_i32 = arith.constant 0 : i32
    %c0_i32_0 = arith.constant 0 : i32
    %c0_i32_1 = arith.constant 0 : i32
    return %arg0, %c0_i32, %c0_i32_0 : i32, i32, i32
  }
  func.func @transform_1(%arg0: i32) -> (i32, i32) {
    %c0_i32 = arith.constant 0 : i32
    %c0_i32_0 = arith.constant 0 : i32
    %c0_i32_1 = arith.constant 0 : i32
    return %c0_i32, %c0_i32_0 : i32, i32
  }
  func.func @transform_2(%arg0: i32) -> (i32, i32) {
    %c0_i32 = arith.constant 0 : i32
    %c0_i32_0 = arith.constant 0 : i32
    %c0_i32_1 = arith.constant 0 : i32
    return %c0_i32, %c0_i32_0 : i32, i32
  }
  func.func @transform_3(%arg0: i32) -> (i32, i32) {
    %c0_i32 = arith.constant 0 : i32
    %c0_i32_0 = arith.constant 0 : i32
    %c0_i32_1 = arith.constant 0 : i32
    return %c0_i32, %c0_i32_0 : i32, i32
  }
  func.func @transform_4(%arg0: i32) -> (i32, i32) {
    %c0_i32 = arith.constant 0 : i32
    %c0_i32_0 = arith.constant 0 : i32
    %c0_i32_1 = arith.constant 0 : i32
    return %c0_i32, %c0_i32_0 : i32, i32
  }
  func.func @transform_5(%arg0: i32) -> (i32, i32) {
    %c0_i32 = arith.constant 0 : i32
    %c0_i32_0 = arith.constant 0 : i32
    %c0_i32_1 = arith.constant 0 : i32
    return %c0_i32, %c0_i32_0 : i32, i32
  }
  func.func @transform_6(%arg0: i32) -> (i32, i32) {
    %c0_i32 = arith.constant 0 : i32
    %c0_i32_0 = arith.constant 0 : i32
    %c0_i32_1 = arith.constant 0 : i32
    return %c0_i32, %c0_i32_0 : i32, i32
  }
  func.func @transform_7(%arg0: i32) -> (i32, i32) {
    %c0_i32 = arith.constant 0 : i32
    %c0_i32_0 = arith.constant 0 : i32
    %c0_i32_1 = arith.constant 0 : i32
    return %c0_i32, %c0_i32_0 : i32, i32
  }
  func.func @transform_8(%arg0: i32) -> (i32, i32) {
    %c0_i32 = arith.constant 0 : i32
    %c0_i32_0 = arith.constant 0 : i32
    %c0_i32_1 = arith.constant 0 : i32
    return %c0_i32, %c0_i32_0 : i32, i32
  }
  func.func @transform_9(%arg0: i32) -> (i32, i32) {
    %c0_i32 = arith.constant 0 : i32
    %c0_i32_0 = arith.constant 0 : i32
    %c0_i32_1 = arith.constant 0 : i32
    return %c0_i32, %c0_i32_0 : i32, i32
  }
  func.func @transform_10(%arg0: i32) -> (i32, i32) {
    %c0_i32 = arith.constant 0 : i32
    %c0_i32_0 = arith.constant 0 : i32
    %c0_i32_1 = arith.constant 0 : i32
    return %c0_i32, %c0_i32_0 : i32, i32
  }
  func.func @transform_11(%arg0: i32) -> (i32, i32) {
    %c0_i32 = arith.constant 0 : i32
    %c0_i32_0 = arith.constant 0 : i32
    %c0_i32_1 = arith.constant 0 : i32
    return %c0_i32, %c0_i32_0 : i32, i32
  }
  func.func @transform_12(%arg0: i32) -> (i32, i32) {
    %c0_i32 = arith.constant 0 : i32
    %c0_i32_0 = arith.constant 0 : i32
    %c0_i32_1 = arith.constant 0 : i32
    return %c0_i32, %c0_i32_0 : i32, i32
  }
  func.func @transform_13(%arg0: i32) -> (i32, i32) {
    %c0_i32 = arith.constant 0 : i32
    %c0_i32_0 = arith.constant 0 : i32
    %c0_i32_1 = arith.constant 0 : i32
    return %c0_i32, %c0_i32_0 : i32, i32
  }
  func.func @transform_14(%arg0: i32) -> (i32, i32) {
    %c0_i32 = arith.constant 0 : i32
    %c0_i32_0 = arith.constant 0 : i32
    %c0_i32_1 = arith.constant 0 : i32
    return %c0_i32, %c0_i32_0 : i32, i32
  }
  func.func @transform_15(%arg0: i32) -> (i32, i32, i32) {
    %c0_i32 = arith.constant 0 : i32
    %c0_i32_0 = arith.constant 0 : i32
    %c0_i32_1 = arith.constant 0 : i32
    return %arg0, %c0_i32, %c0_i32_0 : i32, i32, i32
  }
}

</mosaic_0001>

<bundles_post_ra>
// kernel: tpu_custom_call.1
= control target key start
LH: loop header
LB: loop body
LE: loop exit
PB: predicated region body
PF: predicated region fallthrough
CT: control target
= control target key end

     0   :  { %s4431_s0 = inlined_call_operand.hbm [shape: f32[2,16,128], index: 0, kind: input, shape index: {}]   ;;  %s4432_s1 = inlined_call_operand.hbm [shape: f32[1,128], index: 1, kind: input, shape index: {}]   ;;  %s4433_s2 = inlined_call_operand.hbm [shape: f32[1,128], index: 2, kind: input, shape index: {}]   ;;  %s4434_s3 = inlined_call_operand.hbm [shape: f32[128,384], index: 3, kind: input, shape index: {}]   ;;  %s4435_s4 = inlined_call_operand.vmem [shape: f32[1,384], index: 4, kind: input, shape index: {}]   ;;  %s4436_s5 = inlined_call_operand.hbm [shape: f32[128,128], index: 5, kind: input, shape index: {}]   ;;  %s4437_s6 = inlined_call_operand.vmem [shape: f32[1,128], index: 6, kind: input, shape index: {}]   ;;  %s4438_s7 = inlined_call_operand.vmem [shape: f32[1,128], index: 7, kind: input, shape index: {}]   ;;  %s4439_s8 = inlined_call_operand.vmem [shape: f32[1,128], index: 8, kind: input, shape index: {}]   ;;  %s4440_s9 = inlined_call_operand.vmem [shape: f32[1,128], index: 9, kind: input, shape index: {}]   ;;  %s4441_s10 = inlined_call_operand.hbm [shape: f32[128,512], index: 10, kind: input, shape index: {}]   ;;  %s4442_s11 = inlined_call_operand.vmem [shape: f32[1,512], index: 11, kind: input, shape index: {}]   ;;  %s4443_s12 = inlined_call_operand.hbm [shape: f32[512,128], index: 12, kind: input, shape index: {}]   ;;  %s4444_s13 = inlined_call_operand.vmem [shape: f32[1,128], index: 13, kind: input, shape index: {}]   ;;  %s4445_s14 = inlined_call_operand.vmem [shape: f32[1,128], index: 14, kind: input, shape index: {}]   ;;  %s4446_s15 = inlined_call_operand.hbm [shape: f32[2,16,128], index: 15, kind: output, shape index: {}]  }
   0x1   :  { %4454 = sst [smem:[#allocation21_spill]] %s4432_s1 }
   0x2   :  { %4455 = sst [smem:[#allocation22_spill]] %s4433_s2 }
   0x3   :  { %4456 = sst [smem:[#allocation23_spill]] %s4434_s3 }
   0x4   :  { %4457 = sst [smem:[#allocation24_spill]] %s4436_s5 }
   0x5   :  { %4458 = sst [smem:[#allocation25_spill]] %s4441_s10 }
   0x6   :  { %4459 = sst [smem:[#allocation26_spill]] %s4443_s12 }
   0x7   :  { %4460 = sst [smem:[#allocation27_spill]] %s4445_s14 }
   0x8   :  { %4461 = sst [smem:[#allocation28_spill]] %s4446_s15 }
   0x9   :  { %20 = vsyncpa [#allocation3], 0 }
   0xa   :  { %22 = vsyncpa [#allocation3 + $0x1], 0 }
   0xb   :  { %23 = vsyncpa [#allocation6], 0 }
   0xc   :  { %24 = vsyncpa [#allocation9], 0 }
   0xd   :  { %25 = vsyncpa [#allocation12], 0 }
   0xe   :  { %26 = vsyncpa [#allocation4], 0 }
   0xf   :  { %28 = vsyncpa [#allocation4 + $0x1], 0  ;;  %s3857_s18 = smov 0   ;;  %s3859_s19 = smov 0  }
  0x10   :  { %s3861_s20 = smov 0   ;;  %s3863_s21 = smov 0  }
  0x11 LB: > { %s3757_s22 = smov [#allocation5]   ;;  %s3878_s24 = sadd.s32 4294967295, %s3755_s21   ;;  %s3755_s21 = sphi %s3863_s21, %s4497_s21   ;;  %s3751_s20 = sphi %s3861_s20, %s4496_s20   ;;  %s3747_s19 = sphi %s3859_s19, %s4495_s19   ;;  %s3743_s18 = sphi %s3857_s18, %s4494_s18  }
  0x12   : > { %s398_s23 = sshll.u32 %s3757_s22, 4  ;;  %p3040_p0 = scmp.ge.s32.totalorder %s3755_s21, 1  ;;  %s399_s23 = int_to_ptr.vmem [resolvable:$true] %s398_s23 }
  0x13   : > { %p4448_p1 = scmp.eq.s32.totalorder %s3878_s24, 0  ;;  %p385_p2 = scmp.lt.s32.totalorder %s3755_s21, 3 }
  0x14   : > { %s3758_s26 = smov [#allocation8]   ;;  %s3759_s29 = smov [#allocation11]  }
  0x15   : > { %p3883_p3 = pnand %p3040_p0, %p385_p2  ;;  %s419_s27 = sshll.u32 %s3758_s26, 4  ;;  %s3890_s27 = int_to_ptr.vmem [resolvable:$true] %s419_s27 }
  0x16   : > { %s460_s30 = sshll.u32 %s3759_s29, 4  ;;  %s3506_s17 = scalar_lea.vmem %s399_s23, 16  ;;  %s3898_s30 = int_to_ptr.vmem [resolvable:$true] %s460_s30 }
  0x17   : > { %s4462_s25 = scalar_select %p3883_p3, 1, 0 }
  0x18   : > { %p3357_p5 = pneg %p3883_p3  ;;  %p3507_p8 = scmp.ne.s32.totalorder %s399_s23, %s3506_s17 }
  0x19   : > { %s3513_s22 = scalar_lea.vmem %s399_s23, 32  ;;  %p3514_p11 = scmp.lt.s32.totalorder %s399_s23, %s399_s23 }
  0x1a   : > { %p3894_p6 = pnand %p3357_p5, %p4448_p1  ;;  %p3515_p12 = scmp.lt.s32.totalorder %s3513_s22, %s3506_s17 }
  0x1c   : > { %p3902_p7 = pneg %p3894_p6  ;;  %p3516_p13 = por %p3515_p12, %p3514_p11 }
  0x1e   : > { %p3509_p9 = pnand %p3507_p8, %p3902_p7 }
  0x20   : > { %p3510_p10 = pneg %p3509_p9 }
  0x22   : > { %p3517_p0 = pnand %p3516_p13, %p3510_p10 }
  0x24   : > { %3520 = shalt.err (!%p3517_p0)
}
  0x25   : > { %s4465_s1 = sld [smem:[#allocation21_spill]]  ;;  %s3532_s15 = scalar_lea.vmem %s3890_s27, 6144 }
  0x26   : > { %p3533_p2 = scmp.ne.s32.totalorder %s3890_s27, %s3532_s15  ;;  %p3540_p9 = scmp.lt.s32.totalorder %s3890_s27, %s3890_s27 }
  0x27   : > { %p3541_p11 = scmp.lt.s32.totalorder %s3532_s15, %s3532_s15 }
  0x28   : > { %p3535_p5 = pnand %p3533_p2, %p3902_p7 }
  0x29   : > { %p3542_p10 = por %p3541_p11, %p3540_p9 }
  0x2a   : > { %p3536_p8 = pneg %p3535_p5 }
  0x2b   : > { %3360 = dma.hbm_to_vmem [thread:$0]  (!%p3894_p6), %s4465_s1, 16, %s399_s23, [#allocation6]  }
  0x2c   : > { %p3543_p12 = pnand %p3542_p10, %p3536_p8 }
  0x2e   : > { %3546 = shalt.err (!%p3543_p12)
}
  0x2f   : > { %s3760_s17 = smov 384   ;;  %s3761_s22 = smov 24  }
  0x30   : > { %s4466_s3 = sld [smem:[#allocation23_spill]]  ;;  %s3558_s29 = scalar_lea.vmem %s3898_s30, 8192 }
  0x31   : > { %p3559_p13 = scmp.ne.s32.totalorder %s3898_s30, %s3558_s29  ;;  %p3566_p5 = scmp.lt.s32.totalorder %s3898_s30, %s3898_s30 }
  0x32   : > { %p3567_p8 = scmp.lt.s32.totalorder %s3558_s29, %s3558_s29 }
  0x33   : > { %p3561_p0 = pnand %p3559_p13, %p3902_p7 }
  0x34   : > { %p3568_p9 = por %p3567_p8, %p3566_p5 }
  0x35   : > { %p3562_p2 = pneg %p3561_p0 }
  0x36   : > { %3366 = dma.hbm_to_vmem [thread:$0]  (!%p3894_p6), %s4466_s3, 6144, %s3890_s27, [#allocation9], %s3760_s17, %s3760_s17, %s3761_s22  }
  0x37   : > { %p3569_p11 = pnand %p3568_p9, %p3562_p2 }
  0x39   : > { %3572 = shalt.err (!%p3569_p11)
}
  0x3a   : > { %s3762_s15 = smov 512   ;;  %s3763_s1 = smov 32  }
  0x3b   : > { %s4467_s10 = sld [smem:[#allocation25_spill]]  ;;  %s3764_s27 = smov [#allocation7]  }
  0x3c   : > { %s409_s17 = sshll.u32 %s3764_s27, 4  ;;  %s3765_s22 = smov [#allocation10]   ;;  %s410_s17 = int_to_ptr.vmem [resolvable:$true] %s409_s17 }
  0x3d   : > { %s435_s26 = sshll.u32 %s3765_s22, 4  ;;  %s3584_s3 = scalar_lea.vmem %s410_s17, 16  ;;  %s436_s26 = int_to_ptr.vmem [resolvable:$true] %s435_s26 }
  0x3e   : > { %p3585_p10 = scmp.ne.s32.totalorder %s410_s17, %s3584_s3  ;;  %s3591_s29 = scalar_lea.vmem %s410_s17, 32 }
  0x3f   : > { %p3592_p0 = scmp.lt.s32.totalorder %s410_s17, %s410_s17  ;;  %p3593_p2 = scmp.lt.s32.totalorder %s3591_s29, %s3584_s3 }
  0x40   : > { %p3587_p12 = pnand %p3585_p10, %p3902_p7 }
  0x41   : > { %3372 = dma.hbm_to_vmem [thread:$0]  (!%p3894_p6), %s4467_s10, 8192, %s3898_s30, [#allocation12], %s3762_s15, %s3762_s15, %s3763_s1  }
  0x42   : > { %p3588_p13 = pneg %p3587_p12  ;;  %p3594_p5 = por %p3593_p2, %p3592_p0 }
  0x44   : > { %p3595_p8 = pnand %p3594_p5, %p3588_p13 }
  0x46   : > { %3598 = shalt.err (!%p3595_p8)
}
  0x47   : > { %s4468_s2 = sld [smem:[#allocation22_spill]]  ;;  %s3610_s30 = scalar_lea.vmem %s436_s26, 2048 }
  0x48   : > { %p3611_p9 = scmp.ne.s32.totalorder %s436_s26, %s3610_s30  ;;  %p3618_p12 = scmp.lt.s32.totalorder %s436_s26, %s436_s26 }
  0x49   : > { %p3619_p4 = scmp.lt.s32.totalorder %s3610_s30, %s3610_s30 }
  0x4a   : > { %p3613_p11 = pnand %p3611_p9, %p3902_p7 }
  0x4b   : > { %p3620_p1 = por %p3619_p4, %p3618_p12 }
  0x4c   : > { %p3614_p10 = pneg %p3613_p11 }
  0x4d   : > { %3363 = dma.hbm_to_vmem [thread:$0]  (!%p3894_p6), %s4468_s2, 16, %s410_s17, [#allocation6]  }
  0x4e   : > { %p3621_p3 = pnand %p3620_p1, %p3614_p10 }
  0x50   : > { %3624 = shalt.err (!%p3621_p3)
}
  0x51   : > { %s4450_s3 = smov 128   ;;  %s4451_s15 = smov 8  }
  0x52   : > { %s4469_s5 = sld [smem:[#allocation24_spill]]  ;;  %s3768_s17 = smov [#allocation13]  }
  0x53   : > { %s476_s22 = sshll.u32 %s3768_s17, 4  ;;  %s477_s22 = int_to_ptr.vmem [resolvable:$true] %s476_s22 }
  0x54   : > { %s3636_s29 = scalar_lea.vmem %s477_s22, 8192  ;;  %p3644_p4 = scmp.lt.s32.totalorder %s477_s22, %s477_s22 }
  0x55   : > { %p3637_p13 = scmp.ne.s32.totalorder %s477_s22, %s3636_s29  ;;  %p3645_p0 = scmp.lt.s32.totalorder %s3636_s29, %s3636_s29 }
  0x57   : > { %p3639_p1 = pnand %p3637_p13, %p3902_p7  ;;  %p3646_p2 = por %p3645_p0, %p3644_p4 }
  0x58   : > { %3369 = dma.hbm_to_vmem [thread:$0]  (!%p3894_p6), %s4469_s5, 2048, %s436_s26, [#allocation9], %s4450_s3, %s4450_s3, %s4451_s15  }
  0x59   : > { %p3640_p3 = pneg %p3639_p1 }
  0x5b   : > { %p3647_p5 = pnand %p3646_p2, %p3640_p3 }
  0x5d   : > { %3650 = shalt.err (!%p3647_p5)
}
  0x5e   : > { %s4470_s12 = sld [smem:[#allocation26_spill]]  ;;  %s3039_s28 = sadd.s32 4294967294, %s3755_s21  }
  0x5f   : > { %s3966_s16 = sadd.s32 1, %s3755_s21   ;;  %s41_s30 = sadd.s32 1, %s3751_s20 }
  0x60   : > { %s38_s1 = ssub.s32 %s3755_s21, %s3966_s16  ;;  %p48_p8 = scmp.ne.s32.totalorder %s3751_s20, %s3747_s19 }
  0x61   : > { %p39_p7 = scmp.eq.s32.totalorder %s38_s1, 0  ;;  %p49_p9 = scmp.eq.s32.totalorder %s3755_s21, 0 }
  0x62   : > { %p54_p11 = scmp.ne.s32.totalorder %s3747_s19, %s3743_s18  ;;  %p4473_p12 = scmp.eq.s32.totalorder %s3878_s24, 0 }
  0x63   : > { %s3977_s23 = scalar_select %p39_p7, %s3751_s20, %s41_s30  }
  0x64   : > { %3375 = dma.hbm_to_vmem [thread:$0]  (!%p3894_p6), %s4470_s12, 8192, %s477_s22, [#allocation12], %s4450_s3, %s4450_s3, %s4451_s15  }
  0x65   : > { %4471 = sst [smem:[#allocation20_spill]] %s3977_s23  ;;  %p3979_p10 = por %p49_p9, %p48_p8 }
  0x66   : > { %p3985_p6 = por %p4473_p12, %p54_p11  ;;  %p372_p13 = scmp.eq.s32.totalorder %s3878_s24, 1 }
  0x67   : > { %p378_p1 = scmp.eq.s32.totalorder %s3039_s28, 1  ;;  %p3390_p3 = scmp.lt.s32.totalorder %s3755_s21, 2 }
  0x68   : > { %s4474_s17 = scalar_select %p3985_p6, 1, 0 }
  0x69   : > { %s496_s22 = sand.u32 1, %s3751_s20   ;;  %p3992_p4 = por %p372_p13, %p48_p8 }
  0x6a   : > { %p3996_p0 = por %p378_p1, %p54_p11  ;;  %s3048_s26 = sshll.u32 %s496_s22, 4 }
  0x6b   : > { %s4475_s29 = scalar_select %p3992_p4, 1, 0 }
  0x6c   : > { %s4476_s14 = scalar_select %p3996_p0, 1, 0 }
  0x6d   : > { %s3101_s1 = sshll.u32 %s3755_s21, 8  ;;  %s500_s28 = scalar_lea.vmem [#allocation2], %s3048_s26 }
  0x6e   : > { %s4004_s15 = scalar_lea.hbm %s4431_s0, %s3101_s1  ;;  %s507_s2 = sshll.u32 %s500_s28, 4  ;;  %s4006_s2 = int_to_ptr.vmem [resolvable:$true] %s507_s2 }
  0x6f   : > { %p4010_p2 = pnand %p3390_p3, %p3979_p10  ;;  %s4014_s10 = scalar_lea.sflag [#allocation3], %s496_s22 }
  0x70   : > { %s3651_s12 = scalar_lea.hbm %s4004_s15, 256  ;;  %s3656_s26 = scalar_lea.hbm %s4431_s0, 512 }
  0x71   : > { %p3652_p5 = scmp.ne.s32.totalorder %s4004_s15, %s3651_s12  ;;  %p3653_p7 = pneg %p4010_p2 }
  0x72   : > { %p3657_p11 = scmp.lt.s32.totalorder %s4004_s15, %s4431_s0  ;;  %p3658_p10 = scmp.lt.s32.totalorder %s3656_s26, %s3651_s12 }
  0x73   : > { %p3654_p8 = pnand %p3653_p7, %p3652_p5 }
  0x74   : > { %p3659_p12 = por %p3658_p10, %p3657_p11 }
  0x75   : > { %p3655_p9 = pneg %p3654_p8 }
  0x77   : > { %p3660_p13 = pnand %p3659_p12, %p3655_p9 }
  0x79   : > { %3663 = shalt.err (!%p3660_p13)
}
  0x7a   : > { %s3664_s27 = scalar_lea.vmem %s4006_s2, 256  ;;  %s3769_s22 = smov [#allocation2]  }
  0x7b   : > { %p3665_p1 = scmp.ne.s32.totalorder %s4006_s2, %s3664_s27  ;;  %s3669_s23 = sshll.u32 %s3769_s22, 4  ;;  %s3670_s23 = int_to_ptr.vmem [resolvable:$false] %s3669_s23 }
  0x7c   : > { %s3671_s3 = scalar_lea.vmem %s3670_s23, 512  ;;  %p3672_p8 = scmp.lt.s32.totalorder %s4006_s2, %s3670_s23 }
  0x7d   : > { %p3667_p3 = pnand %p3665_p1, %p3653_p7  ;;  %p3673_p0 = scmp.lt.s32.totalorder %s3671_s3, %s3664_s27 }
  0x7f   : > { %p3668_p5 = pneg %p3667_p3  ;;  %p3674_p4 = por %p3673_p0, %p3672_p8 }
  0x81   : > { %p3675_p6 = pnand %p3674_p4, %p3668_p5 }
  0x83   : > { %3678 = shalt.err (!%p3675_p6)
}
  0x84   : > { %s4478_s12 = smov 8   ;;  %s4479_s1 = smov 128  }
  0x85   : > { %3379 = dma.hbm_to_vmem [thread:$0]  (!%p4010_p2), %s4004_s15, 256, %s4006_s2, %s4014_s10, %s4479_s1, %s4479_s1, %s4478_s12  }
  0x86   : > { %p4480_p7 = scmp.ne.s32.totalorder %s4462_s25, 0 }
  0x87   : > { %s4041_s26 = sand.u32 (!%p4480_p7), 1, %s3747_s19   ;;  %p4481_p6 = scmp.ne.s32.totalorder (!%p4480_p7), %s4474_s17, 0 }
  0x88   : > { %519 = sbr.rel (%p4480_p7) target bundleno = 2628 (0xa44), region = 80  ;;  %s3052_s23 = sshll.u32 (!%p4480_p7), %s4041_s26, 4 }
  0x89   : > { %s522_s30 = scalar_lea.sflag (!%p4480_p7), [#allocation3], %s4041_s26  ;;  %s4047_s5 = scalar_lea.vmem (!%p4480_p7), [#allocation2], %s3052_s23 }
  0x8d   : > { %3722 = dma.done.wait (%p4481_p6), %s522_s30, 256  }
  0x8e   : > { %3724 = vsyncadd (%p4481_p6), %s522_s30, 4294967040  ;;  %p4482_p4 = scmp.eq.s32.totalorder %s3878_s24, 0 }
  0x90   : > { %3726 = dma.done.wait (%p4482_p4), [#allocation6], 32   ;;  %p4483_p0 = pmov %p4482_p4 }
  0x92   : > { %3728 = vsyncadd (%p4483_p0), [#allocation6], 4294967264  ;;  %p4484_p2 = pmov %p4483_p0 }
  0x93   : > { %p4485_p9 = pmov %p4483_p0 }
  0x94   : > { %3730 = dma.done.wait (%p4484_p2), [#allocation9], 8192  }
  0x95   : > { %3732 = vsyncadd (%p4485_p9), [#allocation9], 4294959104  ;;  %p4486_p11 = pmov %p4483_p0 }
  0x96   : > { %p4487_p10 = pmov %p4483_p0 }
  0x97   : > { %3734 = dma.done.wait (%p4486_p11), [#allocation12], 16384  }
  0x98   : > { %3736 = vsyncadd (%p4487_p10), [#allocation12], 4294950912  ;;  %v596_v0 = vld [vmem:[%s4047_s5] sm:$0xff]  ;;  %v597_v1 = vld [vmem:[%s4047_s5 + $0x8] sm:$0xff]  ;;  %v3770_v56 = vmov 0.0   ;;  %s3771_s25 = smov 64  }
  0x99   : > { %600 = vadd.xlane.f32.xlu0 %v596_v0  ;;  %v685_v2 = vld [vmem:[#allocation8 + $0x170] sm:$0xff]  ;;  %v684_v3 = vld [vmem:[#allocation8 + $0x168] sm:$0xff]  ;;  %v682_v4 = vld [vmem:[#allocation8 + $0x158] sm:$0xff]  ;;  %768 = vmatprep.mubr.f32.mxu0 %v3770_v56  ;;  %vm1576_vm0 = vcmask 523264   ;;  %vm1751_vm1 = vcmask 130048   ;;  %s4488_s17 = sld [smem:[#allocation27_spill]] }
  0x9a   : > { %704 = vmatprep.subr.mxu0 %v685_v2  ;;  %v681_v5 = vld [vmem:[#allocation8 + $0x150] sm:$0xff]  ;;  %v686_v6 = vld [vmem:[#allocation8 + $0x178] sm:$0xff]  ;;  %v679_v7 = vld [vmem:[#allocation8 + $0x140] sm:$0xff]  ;;  %s595_s28 = scalar_lea.vmem [#allocation14], %s3052_s23  ;;  %s3102_s22 = sshll.u32 %s3878_s24, 8 }
  0x9b   : > { %705 = vmatpush1.msra.mxu0 %v684_v3  ;;  %3231 = vmatprep.subr.mxu1 %v686_v6  ;;  %v683_v8 = vld [vmem:[#allocation8 + $0x160] sm:$0xff]  ;;  %v678_v9 = vld [vmem:[#allocation8 + $0x138] sm:$0xff]  ;;  %v676_v10 = vld [vmem:[#allocation8 + $0x128] sm:$0xff]  ;;  %s2909_s27 = sshll.u32 %s595_s28, 4  ;;  %s4489_s1 = sld [smem:[#allocation28_spill]]  ;;  %s4387_s27 = int_to_ptr.vmem [resolvable:$true] %s2909_s27 }
  0x9c   : > { %706 = vmatprep.subr.mxu0 %v682_v4  ;;  %3232 = vmatpush3.msra.mxu1 %v686_v6  ;;  %v675_v11 = vld [vmem:[#allocation8 + $0x120] sm:$0xff]  ;;  %v673_v20 = vld [vmem:[#allocation8 + $0x110] sm:$0xff]  ;;  %v680_v21 = vld [vmem:[#allocation8 + $0x148] sm:$0xff]  ;;  %s3679_s23 = scalar_lea.vmem %s4387_s27, 256  ;;  %p4490_p13 = scmp.ne.s32.totalorder %s4475_s29, 0 }
  0x9d   : > { %602 = vadd.xlane.f32.xlu0 %v597_v1  ;;  %707 = vmatpush1.msra.mxu0 %v681_v5  ;;  %v672_v22 = vld [vmem:[#allocation8 + $0x108] sm:$0xff]  ;;  %v670_v23 = vld [vmem:[#allocation8 + $0xf8] sm:$0xff]  ;;  %v677_v24 = vld [vmem:[#allocation8 + $0x130] sm:$0xff]  ;;  %p3680_p12 = scmp.ne.s32.totalorder %s4387_s27, %s3679_s23  ;;  %s3774_s24 = smov [#allocation14]  }
  0x9e   : > { %3233 = vmatprep.subr.mxu1 %v683_v8  ;;  %708 = vmatprep.subr.mxu0 %v679_v7  ;;  %v669_v25 = vld [vmem:[#allocation8 + $0xf0] sm:$0xff]  ;;  %v667_v26 = vld [vmem:[#allocation8 + $0xe0] sm:$0xff]  ;;  %v674_v27 = vld [vmem:[#allocation8 + $0x118] sm:$0xff]  ;;  %s3683_s2 = sshll.u32 %s3774_s24, 4  ;;  %s3684_s2 = int_to_ptr.vmem [resolvable:$false] %s3683_s2 }
  0x9f   : > { %3234 = vmatpush3.msra.mxu1 %v683_v8  ;;  %709 = vmatpush1.msra.mxu0 %v678_v9  ;;  %v666_v28 = vld [vmem:[#allocation8 + $0xd8] sm:$0xff]  ;;  %v664_v29 = vld [vmem:[#allocation8 + $0xc8] sm:$0xff]  ;;  %v671_v30 = vld [vmem:[#allocation8 + $0x100] sm:$0xff]  ;;  %p3681_p1 = pnand %p3680_p12, %p4490_p13  ;;  %s3685_s10 = scalar_lea.vmem %s3684_s2, 512 }
  0xa0   : > { %710 = vmatprep.subr.mxu0 %v676_v10  ;;  %3235 = vmatprep.subr.mxu1 %v680_v21  ;;  %v663_v31 = vld [vmem:[#allocation8 + $0xc0] sm:$0xff]  ;;  %v661_v32 = vld [vmem:[#allocation8 + $0xb0] sm:$0xff]  ;;  %v668_v33 = vld [vmem:[#allocation8 + $0xe8] sm:$0xff]  ;;  %p3686_p5 = scmp.lt.s32.totalorder %s4387_s27, %s3684_s2  ;;  %p3687_p8 = scmp.lt.s32.totalorder %s3685_s10, %s3679_s23 }
  0xa1   : > { %711 = vmatpush1.msra.mxu0 %v675_v11  ;;  %3236 = vmatpush3.msra.mxu1 %v680_v21  ;;  %v660_v34 = vld [vmem:[#allocation8 + $0xa8] sm:$0xff]  ;;  %v658_v35 = vld [vmem:[#allocation8 + $0x98] sm:$0xff]  ;;  %v665_v36 = vld [vmem:[#allocation8 + $0xd0] sm:$0xff]  ;;  %v689_v11 = vlaneseq  ;;  %s4385_s30 = scalar_lea.hbm %s4489_s1, %s3102_s22  ;;  %p3682_p3 = pneg %p3681_p1 }
  0xa2   : > { %712 = vmatprep.subr.mxu0 %v673_v20  ;;  %3237 = vmatprep.subr.mxu1 %v677_v24  ;;  %v657_v37 = vld [vmem:[#allocation8 + $0x90] sm:$0xff]  ;;  %v655_v38 = vld [vmem:[#allocation8 + $0x80] sm:$0xff]  ;;  %v662_v39 = vld [vmem:[#allocation8 + $0xb8] sm:$0xff]  ;;  %p3688_p7 = por %p3687_p8, %p3686_p5 }
  0xa3   : > { %713 = vmatpush1.msra.mxu0 %v672_v22  ;;  %3238 = vmatpush3.msra.mxu1 %v677_v24  ;;  %v654_v40 = vld [vmem:[#allocation8 + $0x78] sm:$0xff]  ;;  %v652_v41 = vld [vmem:[#allocation8 + $0x68] sm:$0xff]  ;;  %v659_v42 = vld [vmem:[#allocation8 + $0xa0] sm:$0xff] }
  0xa4   : > { %714 = vmatprep.subr.mxu0 %v670_v23  ;;  %3239 = vmatprep.subr.mxu1 %v674_v27  ;;  %v651_v43 = vld [vmem:[#allocation8 + $0x60] sm:$0xff]  ;;  %v649_v44 = vld [vmem:[#allocation8 + $0x50] sm:$0xff]  ;;  %v656_v45 = vld [vmem:[#allocation8 + $0x88] sm:$0xff]  ;;  %p3689_p6 = pnand %p3688_p7, %p3682_p3 }
  0xa5   : > { %715 = vmatpush1.msra.mxu0 %v669_v25  ;;  %3240 = vmatpush3.msra.mxu1 %v674_v27  ;;  %v648_v46 = vld [vmem:[#allocation8 + $0x48] sm:$0xff]  ;;  %v646_v47 = vld [vmem:[#allocation8 + $0x38] sm:$0xff]  ;;  %v653_v48 = vld [vmem:[#allocation8 + $0x70] sm:$0xff] }
  0xa6   : > { %716 = vmatprep.subr.mxu0 %v667_v26  ;;  %3241 = vmatprep.subr.mxu1 %v671_v30  ;;  %v645_v49 = vld [vmem:[#allocation8 + $0x30] sm:$0xff]  ;;  %v643_v50 = vld [vmem:[#allocation8 + $0x20] sm:$0xff]  ;;  %v650_v51 = vld [vmem:[#allocation8 + $0x58] sm:$0xff]  ;;  %v3772_v26 = vmov 1983009808  }
  0xa7   : > { %717 = vmatpush1.msra.mxu0 %v666_v28  ;;  %3242 = vmatpush3.msra.mxu1 %v671_v30  ;;  %v642_v52 = vld [vmem:[#allocation8 + $0x18] sm:$0xff]  ;;  %v640_v53 = vld [vmem:[#allocation8 + $0x8] sm:$0xff]  ;;  %v647_v54 = vld [vmem:[#allocation8 + $0x40] sm:$0xff]  ;;  %v866_v27 = vunpack.c.l.s4 %v3772_v26  ;;  %v3773_v28 = vmov 1934713408  }
  0xa8   : > { %718 = vmatprep.subr.mxu0 %v664_v29  ;;  %3243 = vmatprep.subr.mxu1 %v668_v33  ;;  %v639_v55 = vld [vmem:[#allocation8] sm:$0xff]  ;;  %v644_v57 = vld [vmem:[#allocation8 + $0x28] sm:$0xff]  ;;  %v641_v58 = vld [vmem:[#allocation8 + $0x10] sm:$0xff]  ;;  %v897_v29 = vunpack.c.l.s4 %v3773_v28 }
  0xa9   : > { %719 = vmatpush1.msra.mxu0 %v663_v31  ;;  %3244 = vmatpush3.msra.mxu1 %v668_v33  ;;  %v3060_v2 = vld [vmem:[#allocation5] ss:$0 sm:$0xff]  ;;  %v3061_v4 = vld [vmem:[#allocation7] ss:$0 sm:$0xff]  ;;  %v867_v30 = vunpack.c.0.s8 %v866_v27 }
  0xaa   : > { %720 = vmatprep.subr.mxu0 %v661_v32  ;;  %3245 = vmatprep.subr.mxu1 %v665_v36  ;;  %v898_v31 = vunpack.c.0.s8 %v897_v29 }
  0xab   : > { %721 = vmatpush1.msra.mxu0 %v660_v34  ;;  %3246 = vmatpush3.msra.mxu1 %v665_v36 }
  0xac   : > { %722 = vmatprep.subr.mxu0 %v658_v35  ;;  %3247 = vmatprep.subr.mxu1 %v662_v39 }
  0xad   : > { %723 = vmatpush1.msra.mxu0 %v657_v37  ;;  %3248 = vmatpush3.msra.mxu1 %v662_v39 }
  0xae   : > { %724 = vmatprep.subr.mxu0 %v655_v38  ;;  %3249 = vmatprep.subr.mxu1 %v659_v42 }
  0xaf   : > { %725 = vmatpush1.msra.mxu0 %v654_v40  ;;  %3250 = vmatpush3.msra.mxu1 %v659_v42 }
  0xb0   : > { %726 = vmatprep.subr.mxu0 %v652_v41  ;;  %3251 = vmatprep.subr.mxu1 %v656_v45 }
  0xb1   : > { %727 = vmatpush1.msra.mxu0 %v651_v43  ;;  %3252 = vmatpush3.msra.mxu1 %v656_v45 }
  0xb2   : > { %728 = vmatprep.subr.mxu0 %v649_v44  ;;  %3253 = vmatprep.subr.mxu1 %v653_v48 }
  0xb3   : > { %729 = vmatpush1.msra.mxu0 %v648_v46  ;;  %3254 = vmatpush3.msra.mxu1 %v653_v48 }
  0xb4   : > { %730 = vmatprep.subr.mxu0 %v646_v47  ;;  %3255 = vmatprep.subr.mxu1 %v650_v51 }
  0xb5   : > { %731 = vmatpush1.msra.mxu0 %v645_v49  ;;  %3256 = vmatpush3.msra.mxu1 %v650_v51 }
  0xb6   : > { %732 = vmatprep.subr.mxu0 %v643_v50  ;;  %3257 = vmatprep.subr.mxu1 %v647_v54 }
  0xb7   : > { %733 = vmatpush1.msra.mxu0 %v642_v52  ;;  %3258 = vmatpush3.msra.mxu1 %v647_v54 }
  0xb8   : > { %734 = vmatprep.subr.mxu0 %v640_v53  ;;  %3259 = vmatprep.subr.mxu1 %v644_v57 }
  0xb9   : > { %735 = vmatpush1.msra.mxu0 %v639_v55  ;;  %3260 = vmatpush3.msra.mxu1 %v644_v57 }
  0xba   : > { %3261 = vmatprep.subr.mxu1 %v641_v58 }
  0xbb   : > { %3262 = vmatpush3.msra.mxu1 %v641_v58 }
 0x122   : > { %v601_v12 = vpop.xlane.xlu0 %600 }
 0x123   : > { %v605_v13 = vmul.f32 0.0078125, %v601_v12  ;;  %v4079_v12 = vshrl.u32 %v689_v11, 7 }
 0x125   : > { %v4067_v14 = vsub.f32 %v596_v0, %v605_v13  ;;  %v695_v13 = vsub.s32 1, %v4079_v12  ;;  %v4100_v33 = vsub.s32 %v867_v30, %v4079_v12  ;;  %v4106_v38 = vsub.s32 %v898_v31, %v4079_v12 }
 0x126   : > { %v603_v15 = vpop.xlane.xlu0 %602 }
 0x127   : > { %v606_v16 = vmul.f32 0.0078125, %v603_v15  ;;  %v609_v17 = vmul.f32 %v4067_v14, %v4067_v14  ;;  %v691_v15 = vsub.s32 0, %v4079_v12 }
 0x129   : > { %v4071_v18 = vsub.f32 %v597_v1, %v606_v16  ;;  %611 = vadd.xlane.f32.xlu1 %v609_v17 }
 0x12b   : > { %v610_v19 = vmul.f32 %v4071_v18, %v4071_v18 }
 0x12d   : > { %613 = vadd.xlane.f32.xlu1 %v610_v19 }
 0x1b2   : > { %v612_v59 = vpop.xlane.xlu1 %611 }
 0x1b3   : > { %v615_v60 = vmul.f32 0.0078125, %v612_v59 }
 0x1b5   : > { %v617_v61 = vadd.f32 1e-05, %v615_v60 }
 0x1b6   : > { %v614_v62 = vpop.xlane.xlu1 %613 }
 0x1b7   : > { %3453 = vrsqrt.f32 %v617_v61  ;;  %v616_v63 = vmul.f32 0.0078125, %v614_v62 }
 0x1b9   : > { %v618_v0 = vadd.f32 1e-05, %v616_v63 }
 0x1bb   : > { %3455 = vrsqrt.f32 %v618_v0 }
 0x1c4   : > { %v3454_v1 = vpop.eup %3453 }
 0x1c5   : > { %v621_v3 = vmul.f32 %v3454_v1, %v4067_v14  ;;  %v4085_v14 = vld [vmem:[%s4435_s4] sm:$0x7] }
 0x1c6   : > { %v696_v16 = vrot.slane %v4085_v14, %v695_v13  ;;  %v692_v19 = vrot.slane %v4085_v14, %v691_v15 }
 0x1c7   : > { %v629_v5 = vmul.f32 %v3060_v2, %v621_v3 }
 0x1c8   : > { %v3456_v6 = vpop.eup %3455 }
 0x1c9   : > { %v637_v7 = vadd.f32 %v3061_v4, %v629_v5  ;;  %v622_v8 = vmul.f32 %v3456_v6, %v4071_v18 }
 0x1cb   : > { %769 = vmatmul.mubr.f32.vlgmr.msra.gmra.mxu0 %v637_v7  ;;  %3263 = vmatprep.mubr.f32.mxu1 %v637_v7  ;;  %v630_v9 = vmul.f32 %v3060_v2, %v622_v8 }
 0x1cc   : > { %774 = vmatprep.mubr.f32.mxu0 %v3770_v56 }
 0x1cd   : > { %v638_v10 = vadd.f32 %v3061_v4, %v630_v9 }
 0x1cf   : > { %775 = vmatmul.mubr.f32.gmra.mxu0 %v638_v10  ;;  %3264 = vmatmul.mubr.f32.vlgmr.msra.gmra.mxu1 %v638_v10 }
 0x28b   : > { %v770_v17 = vpop.f32.mrf.mxu0 }
 0x28c   : > { %v771_v23 = vadd.f32 %v770_v17, %v692_v19 }
 0x28d   : > { %v772_v18 = vpop.f32.mrf.mxu0 }
 0x28e   : > { %v773_v20 = vadd.f32 %v772_v18, %v696_v16  ;;  %v864_v32 = vcombine.high %v771_v23, %v3770_v56  ;;  %v871_v42 = vrot.slane %v771_v23, %v4100_v33 }
 0x28f   : > { %v776_v21 = vpop.f32.mrf.mxu0 }
 0x290   : > { %1098 = vrot.lane.b32.xlu1 %v773_v20, %s3771_s25  ;;  %v777_v25 = vadd.f32 %v776_v21, %v692_v19  ;;  %v1104_v34 = vcombine.high %v773_v20, %v3770_v56  ;;  %v1111_v39 = vrot.slane %v773_v20, %v4100_v33  ;;  %v878_v43 = vrot.slane %v864_v32, %v4100_v33 }
 0x291   : > { %v778_v22 = vpop.f32.mrf.mxu0 }
 0x292   : > { %v779_v24 = vadd.f32 %v778_v22, %v696_v16  ;;  %v930_v35 = vcombine.high %v777_v25, %v3770_v56  ;;  %v1118_v44 = vrot.slane %v1104_v34, %v4100_v33  ;;  %v4116_v48 = vrot.slane %v777_v25, %v4100_v33 }
 0x294   : > { %858 = vrot.lane.b32.xlu1 %v771_v23, %s3771_s25  ;;  %1100 = vrot.lane.b32.xlu0 %v779_v24, %s3771_s25  ;;  %v1170_v36 = vcombine.high %v779_v24, %v3770_v56  ;;  %v4119_v49 = vrot.slane %v930_v35, %v4100_v33  ;;  %v1177_v50 = vrot.slane %v779_v24, %v4100_v33 }
 0x296   : > { %v1184_v51 = vrot.slane %v1170_v36, %v4100_v33 }
 0x298   : > { %860 = vrot.lane.b32.xlu1 %v777_v25, %s3771_s25 }
 0x302   : > { %v1099_v37 = vpop.permute.xlu1 %1098 }
 0x303   : > { %v1119_v40 = vcombine.high %v1099_v37, %v3770_v56  ;;  %v1126_v41 = vrot.slane %v1099_v37, %v4100_v33 }
 0x305   : > { %v1133_v45 = vrot.slane %v1119_v40, %v4100_v33  ;;  %v1134_v46 = vcombine.low %v1111_v39, %v1126_v41  ;;  %v1135_v47 = vcombine.high %v1111_v39, %v1126_v41 }
 0x306   : > { %v1101_v52 = vpop.permute.xlu0 %1100  ;;  %v859_v53 = vpop.permute.xlu1 %858 }
 0x307   : > { %v1142_v54 = vrot.slane %v1134_v46, %v4106_v38  ;;  %v1149_v55 = vrot.slane %v1135_v47, %v4106_v38  ;;  %v1150_v57 = vcombine.low %v1118_v44, %v1133_v45  ;;  %v1151_v58 = vcombine.high %v1118_v44, %v1133_v45 }
 0x308   : > { %v1185_v59 = vcombine.high %v1101_v52, %v3770_v56  ;;  %v1192_v60 = vrot.slane %v1101_v52, %v4100_v33  ;;  %v879_v61 = vcombine.high %v859_v53, %v3770_v56  ;;  %v886_v62 = vrot.slane %v859_v53, %v4100_v33 }
 0x309   : > { %v1158_v63 = vrot.slane %v1150_v57, %v4106_v38  ;;  %v1165_v0 = vrot.slane %v1151_v58, %v4106_v38  ;;  %v1236_v1 = vcombine.low %v1142_v54, %v1149_v55  ;;  %v3066_v2 = vcombine.high %v1142_v54, %v1149_v55 }
 0x30a   : > { %v1199_v3 = vrot.slane %v1185_v59, %v4100_v33  ;;  %v1200_v4 = vcombine.low %v1177_v50, %v1192_v60  ;;  %v1201_v5 = vcombine.high %v1177_v50, %v1192_v60  ;;  %v893_v6 = vrot.slane %v879_v61, %v4100_v33  ;;  %v861_v31 = vpop.permute.xlu1 %860 }
 0x30b   : > { %v4134_v7 = vrot.slane %v1236_v1, %v4100_v33  ;;  %v4137_v8 = vrot.slane %v3066_v2, %v4100_v33  ;;  %v1252_v9 = vcombine.low %v1158_v63, %v1165_v0  ;;  %v3067_v10 = vcombine.high %v1158_v63, %v1165_v0 }
 0x30c   : > { %v1208_v11 = vrot.slane %v1200_v4, %v4106_v38  ;;  %v1215_v16 = vrot.slane %v1201_v5, %v4106_v38  ;;  %v1216_v17 = vcombine.low %v1184_v51, %v1199_v3  ;;  %v1217_v18 = vcombine.high %v1184_v51, %v1199_v3 }
 0x30d   : > { %v1259_v19 = vrot.slane %v1252_v9, %v4100_v33  ;;  %v1267_v20 = vrot.slane %v3067_v10, %v4100_v33  ;;  %v894_v21 = vcombine.low %v871_v42, %v886_v62  ;;  %v895_v22 = vcombine.high %v871_v42, %v886_v62 }
 0x30e   : > { %v1224_v23 = vrot.slane %v1216_v17, %v4106_v38  ;;  %v1231_v24 = vrot.slane %v1217_v18, %v4106_v38  ;;  %v1286_v25 = vcombine.low %v1208_v11, %v1215_v16  ;;  %v3068_v26 = vcombine.high %v1208_v11, %v1215_v16 }
 0x30f   : > { %v902_v27 = vrot.slane %v894_v21, %v4106_v38  ;;  %v909_v28 = vrot.slane %v895_v22, %v4106_v38  ;;  %v910_v29 = vcombine.low %v878_v43, %v893_v6  ;;  %v911_v30 = vcombine.high %v878_v43, %v893_v6 }
 0x310   : > { %v1293_v32 = vrot.slane %v1286_v25, %v4100_v33  ;;  %v1301_v34 = vrot.slane %v3068_v26, %v4100_v33  ;;  %v1302_v35 = vcombine.low %v1224_v23, %v1231_v24  ;;  %v3069_v36 = vcombine.high %v1224_v23, %v1231_v24 }
 0x311   : > { %v918_v37 = vrot.slane %v910_v29, %v4106_v38  ;;  %v925_v39 = vrot.slane %v911_v30, %v4106_v38  ;;  %v996_v40 = vcombine.low %v902_v27, %v909_v28  ;;  %v3062_v41 = vcombine.high %v902_v27, %v909_v28 }
 0x312   : > { %v1309_v42 = vrot.slane %v1302_v35, %v4100_v33  ;;  %v1317_v44 = vrot.slane %v3069_v36, %v4100_v33  ;;  %v945_v43 = vcombine.high %v861_v31, %v3770_v56  ;;  %v952_v45 = vrot.slane %v861_v31, %v4100_v33  ;;  %v3265_v35 = vpop.f32.mrf.mxu1 }
 0x313   : > { %v1003_v46 = vrot.slane %v996_v40, %v4100_v33  ;;  %v1011_v47 = vrot.slane %v3062_v41, %v4100_v33  ;;  %v1012_v50 = vcombine.low %v918_v37, %v925_v39  ;;  %v3063_v51 = vcombine.high %v918_v37, %v925_v39 }
 0x314   : > { %v959_v52 = vrot.slane %v945_v43, %v4100_v33  ;;  %v960_v53 = vcombine.low %v4116_v48, %v952_v45  ;;  %v961_v54 = vcombine.high %v4116_v48, %v952_v45  ;;  %v1318_v55 = vcombine.low %v1293_v32, %v1301_v34  ;;  %v847_v36 = vpop.f32.mrf.mxu1 }
 0x315   : > { %v1019_v57 = vrot.slane %v1012_v50, %v4100_v33  ;;  %v1027_v58 = vrot.slane %v3063_v51, %v4100_v33  ;;  %v1326_v59 = vcombine.low %v1309_v42, %v1317_v44  ;;  %v1028_v60 = vcombine.low %v1003_v46, %v1011_v47 }
 0x316   : > { %v968_v61 = vrot.slane %v960_v53, %v4106_v38  ;;  %v975_v62 = vrot.slane %v961_v54, %v4106_v38  ;;  %v976_v63 = vcombine.low %v4119_v49, %v959_v52  ;;  %v977_v0 = vcombine.high %v4119_v49, %v959_v52 }
 0x317   : > { %v1325_v1 = vrot.slane %v1318_v55, %v4106_v38  ;;  %v1333_v2 = vrot.slane %v1326_v59, %v4106_v38  ;;  %v1035_v48 = vrot.slane %v1028_v60, %v4106_v38  ;;  %v1036_v3 = vcombine.low %v1019_v57, %v1027_v58 }
 0x318   : > { %v984_v4 = vrot.slane %v976_v63, %v4106_v38  ;;  %v991_v5 = vrot.slane %v977_v0, %v4106_v38  ;;  %v1046_v6 = vcombine.low %v968_v61, %v975_v62  ;;  %v3064_v9 = vcombine.high %v968_v61, %v975_v62 }
 0x319   : > { %v1334_v10 = vcombine.low %v1325_v1, %v1333_v2  ;;  %v1043_v11 = vrot.slane %v1036_v3, %v4106_v38  ;;  %v1268_v16 = vcombine.low %v4134_v7, %v4137_v8  ;;  %v1276_v49 = vcombine.low %v1259_v19, %v1267_v20 }
 0x31a   : > { %v1053_v17 = vrot.slane %v1046_v6, %v4100_v33  ;;  %v1061_v18 = vrot.slane %v3064_v9, %v4100_v33  ;;  %v1062_v21 = vcombine.low %v984_v4, %v991_v5  ;;  %v3065_v22 = vcombine.high %v984_v4, %v991_v5 }
 0x31b   : > { %3266 = vmatprep.subr.msk.mxu1 %vm1576_vm0, %v1334_v10  ;;  %v1044_v23 = vcombine.low %v1035_v48, %v1043_v11  ;;  %v1275_v24 = vrot.slane %v1268_v16, %v4106_v38  ;;  %v1283_v25 = vrot.slane %v1276_v49, %v4106_v38  ;;  %v1335_v19 = vcombine.high %v1325_v1, %v1333_v2 }
 0x31c   : > { %v1069_v26 = vrot.slane %v1062_v21, %v4100_v33  ;;  %v1077_v27 = vrot.slane %v3065_v22, %v4100_v33  ;;  %v1078_v28 = vcombine.low %v1053_v17, %v1061_v18  ;;  %3267 = vmatpush3.xpose.msk.msra.mxu1 %vm1576_vm0, %v1334_v10  ;;  %v1045_v31 = vcombine.high %v1035_v48, %v1043_v11 }
 0x31d   : > { %3270 = vmatprep.mubr.msk.f32.mxu1 %vm1576_vm0, %v1044_v23  ;;  %v1284_v7 = vcombine.low %v1275_v24, %v1283_v25  ;;  %v1285_v32 = vcombine.high %v1275_v24, %v1283_v25  ;;  %v699_v4 = vsub.s32 2, %v4079_v12 }
 0x31e   : > { %v1086_v8 = vcombine.low %v1069_v26, %v1077_v27  ;;  %v1085_v20 = vrot.slane %v1078_v28, %v4106_v38 }
 0x31f   : > { %3268 = vmatprep.subr.msk.mxu1 %vm1576_vm0, %v1284_v7  ;;  %v700_v5 = vrot.slane %v4085_v14, %v699_v4 }
 0x320   : > { %3269 = vmatpush3.xpose.msk.msra.mxu1 %vm1576_vm0, %v1284_v7  ;;  %v1093_v29 = vrot.slane %v1086_v8, %v4106_v38 }
 0x321   : > { %3273 = vmatprep.subr.msk.mxu1 %vm1576_vm0, %v1335_v19  ;;  %v848_v6 = vadd.f32 %v847_v36, %v700_v5  ;;  %v853_v9 = vadd.f32 %v3265_v35, %v700_v5 }
 0x322   : > { %v1094_v30 = vcombine.low %v1085_v20, %v1093_v29  ;;  %v1095_v34 = vcombine.high %v1085_v20, %v1093_v29 }
 0x323   : > { %v1410_v49 = vcombine.high %v853_v9, %v3770_v56  ;;  %v1417_v21 = vrot.slane %v853_v9, %v4100_v33  ;;  %v1344_v25 = vcombine.high %v848_v6, %v3770_v56  ;;  %v1351_v8 = vrot.slane %v848_v6, %v4100_v33 }
 0x324   : > { %3271 = vmatmul.mubr.msk.f32.vlgmr.msra.gmra.mxu1 %vm1576_vm0, %v1094_v30 }
 0x325   : > { %3274 = vmatpush3.xpose.msk.msra.mxu1 %vm1576_vm0, %v1335_v19  ;;  %3277 = vmatprep.mubr.msk.f32.mxu1 %vm1576_vm0, %v1045_v31  ;;  %v1424_v24 = vrot.slane %v1410_v49, %v4100_v33 }
 0x326   : > { %3275 = vmatprep.subr.msk.mxu1 %vm1576_vm0, %v1285_v32 }
 0x329   : > { %3276 = vmatpush3.xpose.msk.msra.mxu1 %vm1576_vm0, %v1285_v32  ;;  %v1358_v32 = vrot.slane %v1344_v25, %v4100_v33 }
 0x32c   : > { %3278 = vmatmul.mubr.msk.f32.vlgmr.msra.gmra.mxu1 %vm1576_vm0, %v1095_v34 }
 0x3e4   : > { %v3272_v37 = vpop.f32.mrf.mxu1 }
 0x3e5   : > { %v1755_v39 = vsel %vm1751_vm1, %v3272_v37, -inf }
 0x3e6   : > { %1756 = vmax.xlane.f32.xlu1 %v1755_v39  ;;  %v1655_v40 = vpop.f32.mrf.mxu1 }
 0x3e7   : > { %v1752_v41 = vsel %vm1751_vm1, %v1655_v40, -inf }
 0x3e8   : > { %1753 = vmax.xlane.f32.xlu0 %v1752_v41 }
 0x3ec   : > { %v3279_v42 = vpop.f32.mrf.mxu1 }
 0x3ed   : > { %v1761_v45 = vsel %vm1751_vm1, %v3279_v42, -inf }
 0x3ee   : > { %v1742_v44 = vpop.f32.mrf.mxu1 }
 0x3ef   : > { %v1758_v43 = vsel %vm1751_vm1, %v1742_v44, -inf }
 0x3f0   : > { %1759 = vmax.xlane.f32.xlu0 %v1758_v43 }
 0x3f4   : > { %1762 = vmax.xlane.f32.xlu0 %v1761_v45 }
 0x46f   : > { %v1757_v46 = vpop.xlane.xlu1 %1756 }
 0x470   : > { %v1765_v47 = vsub.f32 %v3272_v37, %v1757_v46 }
 0x471   : > { %v1754_v50 = vpop.xlane.xlu0 %1753 }
 0x472   : > { %v1770_v51 = vmul.f32 1.442695, %v1765_v47  ;;  %v1764_v52 = vsub.f32 %v1655_v40, %v1754_v50 }
 0x474   : > { %3457 = vpow2.f32 %v1770_v51  ;;  %v1768_v53 = vmul.f32 1.442695, %v1764_v52 }
 0x476   : > { %3459 = vpow2.f32 %v1768_v53 }
 0x479   : > { %v1760_v54 = vpop.xlane.xlu0 %1759 }
 0x47a   : > { %v1766_v55 = vsub.f32 %v1742_v44, %v1760_v54 }
 0x47c   : > { %v1772_v57 = vmul.f32 1.442695, %v1766_v55 }
 0x47d   : > { %v1763_v58 = vpop.xlane.xlu0 %1762 }
 0x47e   : > { %3461 = vpow2.f32 %v1772_v57  ;;  %v1767_v59 = vsub.f32 %v3279_v42, %v1763_v58 }
 0x480   : > { %v1774_v60 = vmul.f32 1.442695, %v1767_v59 }
 0x481   : > { %v4198_v61 = vpop.eup %3457 }
 0x482   : > { %3463 = vpow2.f32 %v1774_v60  ;;  %v1779_v62 = vsel %vm1751_vm1, %v4198_v61, 0.0 }
 0x483   : > { %v3460_v63 = vpop.eup %3459  ;;  %1780 = vadd.xlane.f32.xlu1 %v1779_v62 }
 0x484   : > { %v1776_v0 = vsel %vm1751_vm1, %v3460_v63, 0.0 }
 0x485   : > { %1777 = vadd.xlane.f32.xlu0 %v1776_v0 }
 0x48b   : > { %v4203_v1 = vpop.eup %3461 }
 0x48c   : > { %v1782_v2 = vsel %vm1751_vm1, %v4203_v1, 0.0 }
 0x48d   : > { %1783 = vadd.xlane.f32.xlu0 %v1782_v2 }
 0x48f   : > { %v4207_v48 = vpop.eup %3463 }
 0x490   : > { %v1785_v3 = vsel %vm1751_vm1, %v4207_v48, 0.0 }
 0x491   : > { %1786 = vadd.xlane.f32.xlu1 %v1785_v3 }
 0x4a2   : > { %1338 = vrot.lane.b32.xlu1 %v848_v6, %s3771_s25 }
 0x4a3   : > { %1340 = vrot.lane.b32.xlu0 %v853_v9, %s3771_s25 }
 0x50c   : > { %v1781_v11 = vpop.xlane.xlu1 %1780 }
 0x50e   : > { %v1778_v10 = vpop.xlane.xlu0 %1777 }
 0x50f   : > { %3465 = vrcp.f32 %v1778_v10 }
 0x510   : > { %3467 = vrcp.f32 %v1781_v11 }
 0x516   : > { %v1784_v16 = vpop.xlane.xlu0 %1783 }
 0x517   : > { %3469 = vrcp.f32 %v1784_v16 }
 0x51a   : > { %v1787_v17 = vpop.xlane.xlu1 %1786  ;;  %v1341_v18 = vpop.permute.xlu0 %1340 }
 0x51b   : > { %v1425_v22 = vcombine.high %v1341_v18, %v3770_v56  ;;  %v1432_v14 = vrot.slane %v1341_v18, %v4100_v33  ;;  %3471 = vrcp.f32 %v1787_v17 }
 0x51c   : > { %v3466_v23 = vpop.eup %3465 }
 0x51d   : > { %v1439_v26 = vrot.slane %v1425_v22, %v4100_v33  ;;  %v1440_v27 = vcombine.low %v1417_v21, %v1432_v14  ;;  %v1441_v28 = vcombine.high %v1417_v21, %v1432_v14  ;;  %v1792_v7 = vmul.f32 %v3466_v23, %v3460_v63  ;;  %v3468_v18 = vpop.eup %3467 }
 0x51e   : > { %v1339_v19 = vpop.permute.xlu1 %1338  ;;  %v1793_v25 = vmul.f32 %v3468_v18, %v4198_v61  ;;  %v2215_v61 = vld [vmem:[#allocation10 + $0x78] sm:$0xff] }
 0x51f   : > { %v1448_v20 = vrot.slane %v1440_v27, %v4106_v38  ;;  %v1455_v29 = vrot.slane %v1441_v28, %v4106_v38  ;;  %v1456_v30 = vcombine.low %v1424_v24, %v1439_v26  ;;  %v1457_v31 = vcombine.high %v1424_v24, %v1439_v26  ;;  %3284 = vmatprep.mubr.msk.f32.mxu1 %vm1751_vm1, %v1792_v7 }
 0x520   : > { %v1359_v34 = vcombine.high %v1339_v19, %v3770_v56  ;;  %v1366_v35 = vrot.slane %v1339_v19, %v4100_v33  ;;  %3294 = vmatprep.subr.mxu0 %v2215_v61  ;;  %v2212_v19 = vld [vmem:[#allocation10 + $0x60] sm:$0xff] }
 0x521   : > { %v1464_v36 = vrot.slane %v1456_v30, %v4106_v38  ;;  %v1471_v37 = vrot.slane %v1457_v31, %v4106_v38  ;;  %v1526_v39 = vcombine.low %v1448_v20, %v1455_v29  ;;  %v3072_v40 = vcombine.high %v1448_v20, %v1455_v29  ;;  %3295 = vmatpush3.msra.mxu0 %v2215_v61  ;;  %v2211_v20 = vld [vmem:[#allocation10 + $0x58] sm:$0xff]  ;;  %v2210_v29 = vld [vmem:[#allocation10 + $0x50] sm:$0xff]  ;;  %v2208_v30 = vld [vmem:[#allocation10 + $0x40] sm:$0xff] }
 0x522   : > { %v1373_v41 = vrot.slane %v1359_v34, %v4100_v33  ;;  %v1374_v42 = vcombine.low %v1351_v8, %v1366_v35  ;;  %v1375_v44 = vcombine.high %v1351_v8, %v1366_v35  ;;  %v2214_v8 = vld [vmem:[#allocation10 + $0x70] sm:$0xff]  ;;  %v2207_v31 = vld [vmem:[#allocation10 + $0x38] sm:$0xff]  ;;  %v2205_v34 = vld [vmem:[#allocation10 + $0x28] sm:$0xff] }
 0x523   : > { %v1533_v43 = vrot.slane %v1526_v39, %v4100_v33  ;;  %v1541_v45 = vrot.slane %v3072_v40, %v4100_v33  ;;  %v1542_v46 = vcombine.low %v1464_v36, %v1471_v37  ;;  %v3073_v47 = vcombine.high %v1464_v36, %v1471_v37  ;;  %3296 = vmatprep.subr.mxu0 %v2214_v8  ;;  %v2204_v35 = vld [vmem:[#allocation10 + $0x20] sm:$0xff]  ;;  %v2203_v36 = vld [vmem:[#allocation10 + $0x18] sm:$0xff]  ;;  %v2202_v37 = vld [vmem:[#allocation10 + $0x10] sm:$0xff] }
 0x524   : > { %v1382_v50 = vrot.slane %v1374_v42, %v4106_v38  ;;  %v1389_v51 = vrot.slane %v1375_v44, %v4106_v38  ;;  %v1390_v52 = vcombine.low %v1358_v32, %v1373_v41  ;;  %v1391_v53 = vcombine.high %v1358_v32, %v1373_v41  ;;  %v3470_v14 = vpop.eup %3469  ;;  %3297 = vmatpush3.msra.mxu0 %v2214_v8  ;;  %v2206_v32 = vld [vmem:[#allocation10 + $0x30] sm:$0xff]  ;;  %v2201_v61 = vld [vmem:[#allocation10 + $0x8] sm:$0xff]  ;;  %v2200_v8 = vld [vmem:[#allocation10] sm:$0xff] }
 0x525   : > { %v1549_v54 = vrot.slane %v1542_v46, %v4100_v33  ;;  %v1557_v55 = vrot.slane %v3073_v47, %v4100_v33  ;;  %v1558_v57 = vcombine.low %v1533_v43, %v1541_v45  ;;  %v1794_v27 = vmul.f32 %v3470_v14, %v4203_v1  ;;  %v2213_v1 = vld [vmem:[#allocation10 + $0x68] sm:$0xff] }
 0x526   : > { %v1398_v58 = vrot.slane %v1390_v52, %v4106_v38  ;;  %v1405_v59 = vrot.slane %v1391_v53, %v4106_v38  ;;  %v1476_v60 = vcombine.low %v1382_v50, %v1389_v51  ;;  %v3070_v62 = vcombine.high %v1382_v50, %v1389_v51  ;;  %3298 = vmatprep.subr.mxu0 %v2213_v1 }
 0x527   : > { %v1566_v63 = vcombine.low %v1549_v54, %v1557_v55  ;;  %v1565_v6 = vrot.slane %v1558_v57, %v4106_v38  ;;  %3299 = vmatpush3.msra.mxu0 %v2213_v1 }
 0x528   : > { %v1483_v0 = vrot.slane %v1476_v60, %v4100_v33  ;;  %v1491_v2 = vrot.slane %v3070_v62, %v4100_v33  ;;  %v1492_v3 = vcombine.low %v1398_v58, %v1405_v59  ;;  %v3071_v5 = vcombine.high %v1398_v58, %v1405_v59  ;;  %v3472_v24 = vpop.eup %3471  ;;  %3300 = vmatprep.subr.mxu0 %v2212_v19 }
 0x529   : > { %v1573_v9 = vrot.slane %v1566_v63, %v4106_v38  ;;  %v1795_v7 = vmul.f32 %v3472_v24, %v4207_v48  ;;  %3301 = vmatpush3.msra.mxu0 %v2212_v19  ;;  %v2209_v48 = vld [vmem:[#allocation10 + $0x48] sm:$0xff] }
 0x52a   : > { %v1499_v10 = vrot.slane %v1492_v3, %v4100_v33  ;;  %v1507_v11 = vrot.slane %v3071_v5, %v4100_v33  ;;  %v1508_v16 = vcombine.low %v1483_v0, %v1491_v2  ;;  %3302 = vmatprep.subr.mxu0 %v2211_v20 }
 0x52b   : > { %v1574_v49 = vcombine.low %v1565_v6, %v1573_v9  ;;  %v1575_v26 = vcombine.high %v1565_v6, %v1573_v9  ;;  %3303 = vmatpush3.msra.mxu0 %v2211_v20 }
 0x52c   : > { %v1516_v17 = vcombine.low %v1499_v10, %v1507_v11  ;;  %v1515_v21 = vrot.slane %v1508_v16, %v4106_v38  ;;  %3304 = vmatprep.subr.mxu0 %v2210_v29 }
 0x52d   : > { %3280 = vmatprep.subr.mxu1 %v1574_v49  ;;  %3305 = vmatpush3.msra.mxu0 %v2210_v29 }
 0x52e   : > { %3281 = vmatpush3.msra.mxu1 %v1574_v49  ;;  %v1523_v22 = vrot.slane %v1516_v17, %v4106_v38  ;;  %3306 = vmatprep.subr.mxu0 %v2209_v48 }
 0x52f   : > { %3307 = vmatpush3.msra.mxu0 %v2209_v48 }
 0x530   : > { %v1524_v23 = vcombine.low %v1515_v21, %v1523_v22  ;;  %v1525_v28 = vcombine.high %v1515_v21, %v1523_v22  ;;  %3308 = vmatprep.subr.mxu0 %v2208_v30 }
 0x531   : > { %3309 = vmatpush3.msra.mxu0 %v2208_v30 }
 0x532   : > { %3282 = vmatprep.subr.mxu1 %v1524_v23  ;;  %3310 = vmatprep.subr.mxu0 %v2207_v31 }
 0x533   : > { %3283 = vmatpush3.msra.mxu1 %v1524_v23  ;;  %3311 = vmatpush3.msra.mxu0 %v2207_v31 }
 0x534   : > { %3285 = vmatmul.mubr.msk.f32.vlgmr.msra.gmra.mxu1 %vm1751_vm1, %v1793_v25  ;;  %3287 = vmatprep.subr.mxu1 %v1575_v26 }
 0x535   : > { %3288 = vmatpush3.msra.mxu1 %v1575_v26  ;;  %3291 = vmatprep.mubr.msk.f32.mxu1 %vm1751_vm1, %v1794_v27 }
 0x536   : > { %3289 = vmatprep.subr.mxu1 %v1525_v28  ;;  %3312 = vmatprep.subr.mxu0 %v2206_v32 }
 0x537   : > { %3290 = vmatpush3.msra.mxu1 %v1525_v28  ;;  %3313 = vmatpush3.msra.mxu0 %v2206_v32 }
 0x538   : > { %3292 = vmatmul.mubr.msk.f32.vlgmr.msra.gmra.mxu1 %vm1751_vm1, %v1795_v7  ;;  %3314 = vmatprep.subr.mxu0 %v2205_v34 }
 0x539   : > { %2499 = vmatprep.mubr.f32.mxu1 %v3770_v56  ;;  %3315 = vmatpush3.msra.mxu0 %v2205_v34 }
 0x53a   : > { %3316 = vmatprep.subr.mxu0 %v2204_v35 }
 0x53b   : > { %3317 = vmatpush3.msra.mxu0 %v2204_v35 }
 0x53c   : > { %3318 = vmatprep.subr.mxu0 %v2203_v36 }
 0x53d   : > { %3319 = vmatpush3.msra.mxu0 %v2203_v36 }
 0x53e   : > { %3320 = vmatprep.subr.mxu0 %v2202_v37 }
 0x53f   : > { %3321 = vmatpush3.msra.mxu0 %v2202_v37 }
 0x540   : > { %3322 = vmatprep.subr.mxu0 %v2201_v61 }
 0x541   : > { %3323 = vmatpush3.msra.mxu0 %v2201_v61 }
 0x542   : > { %3324 = vmatprep.subr.mxu0 %v2200_v8 }
 0x543   : > { %3325 = vmatpush3.msra.mxu0 %v2200_v8 }
 0x5f4   : > { %v3286_v39 = vpop.f32.mrf.mxu1 }
 0x5f5   : > { %v2024_v40 = vcombine.high %v3286_v39, %v3770_v56  ;;  %v2031_v44 = vrot.slane %v3286_v39, %v4100_v33 }
 0x5f6   : > { %v1868_v41 = vpop.f32.mrf.mxu1 }
 0x5f7   : > { %v2038_v46 = vrot.slane %v2024_v40, %v4100_v33  ;;  %v1958_v47 = vcombine.high %v1868_v41, %v3770_v56  ;;  %v1965_v55 = vrot.slane %v1868_v41, %v4100_v33 }
 0x5f8   : > { %v3293_v42 = vpop.f32.mrf.mxu1 }
 0x5f9   : > { %v2039_v43 = vcombine.high %v3293_v42, %v3770_v56  ;;  %v2046_v45 = vrot.slane %v3293_v42, %v4100_v33  ;;  %v1972_v63 = vrot.slane %v1958_v47, %v4100_v33 }
 0x5fa   : > { %v1949_v50 = vpop.f32.mrf.mxu1 }
 0x5fb   : > { %v2053_v51 = vrot.slane %v2039_v43, %v4100_v33  ;;  %v2054_v52 = vcombine.low %v2031_v44, %v2046_v45  ;;  %v2055_v53 = vcombine.high %v2031_v44, %v2046_v45  ;;  %v1973_v54 = vcombine.high %v1949_v50, %v3770_v56 }
 0x5fc   : > { %v1980_v57 = vrot.slane %v1949_v50, %v4100_v33 }
 0x5fd   : > { %v2062_v58 = vrot.slane %v2054_v52, %v4106_v38  ;;  %v2069_v59 = vrot.slane %v2055_v53, %v4106_v38  ;;  %v2070_v60 = vcombine.low %v2038_v46, %v2053_v51  ;;  %v2071_v62 = vcombine.high %v2038_v46, %v2053_v51  ;;  %v3091_v52 = vld [vmem:[%s4438_s7] ss:$0 sm:$0xff] }
 0x5fe   : > { %v1987_v0 = vrot.slane %v1973_v54, %v4100_v33  ;;  %v1988_v2 = vcombine.low %v1965_v55, %v1980_v57  ;;  %v1989_v3 = vcombine.high %v1965_v55, %v1980_v57 }
 0x5ff   : > { %v2078_v5 = vrot.slane %v2070_v60, %v4106_v38  ;;  %v2085_v6 = vrot.slane %v2071_v62, %v4106_v38  ;;  %v2140_v9 = vcombine.low %v2062_v58, %v2069_v59  ;;  %v3088_v10 = vcombine.high %v2062_v58, %v2069_v59  ;;  %v3493_v59 = vld [vmem:[%s4047_s5 + $0x8] sm:$0xff]  ;;  %v3494_v62 = vld [vmem:[%s4047_s5] sm:$0xff]  ;;  %s2896_s5 = scalar_lea.sflag [#allocation4], %s4041_s26 }
 0x600   : > { %v1996_v11 = vrot.slane %v1988_v2, %v4106_v38  ;;  %v2003_v16 = vrot.slane %v1989_v3, %v4106_v38  ;;  %v2004_v49 = vcombine.low %v1972_v63, %v1987_v0  ;;  %v2005_v17 = vcombine.high %v1972_v63, %v1987_v0  ;;  %v2410_v0 = vld [vmem:[#allocation11 + $0x1e8] sm:$0xff]  ;;  %v2412_v2 = vld [vmem:[#allocation11 + $0x1f8] sm:$0xff]  ;;  %v2409_v3 = vld [vmem:[#allocation11 + $0x1e0] sm:$0xff] }
 0x601   : > { %v2147_v18 = vrot.slane %v2140_v9, %v4100_v33  ;;  %v2155_v21 = vrot.slane %v3088_v10, %v4100_v33  ;;  %v2156_v22 = vcombine.low %v2078_v5, %v2085_v6  ;;  %v3089_v14 = vcombine.high %v2078_v5, %v2085_v6  ;;  %2435 = vmatprep.subr.mxu1 %v2410_v0  ;;  %v2411_v5 = vld [vmem:[#allocation11 + $0x1f0] sm:$0xff]  ;;  %v2406_v6 = vld [vmem:[#allocation11 + $0x1c8] sm:$0xff]  ;;  %v2408_v9 = vld [vmem:[#allocation11 + $0x1d8] sm:$0xff] }
 0x602   : > { %v2012_v23 = vrot.slane %v2004_v49, %v4106_v38  ;;  %v2019_v24 = vrot.slane %v2005_v17, %v4106_v38  ;;  %v2090_v25 = vcombine.low %v1996_v11, %v2003_v16  ;;  %v3086_v26 = vcombine.high %v1996_v11, %v2003_v16  ;;  %2512 = vmatprep.subr.mxu0 %v2412_v2  ;;  %v2405_v10 = vld [vmem:[#allocation11 + $0x1c0] sm:$0xff]  ;;  %v2407_v11 = vld [vmem:[#allocation11 + $0x1d0] sm:$0xff]  ;;  %v2402_v16 = vld [vmem:[#allocation11 + $0x1a8] sm:$0xff] }
 0x603   : > { %v2163_v27 = vrot.slane %v2156_v22, %v4100_v33  ;;  %v2171_v28 = vrot.slane %v3089_v14, %v4100_v33  ;;  %v2172_v7 = vcombine.low %v2147_v18, %v2155_v21  ;;  %2436 = vmatpush1.msra.mxu1 %v2409_v3  ;;  %v2404_v49 = vld [vmem:[#allocation11 + $0x1b8] sm:$0xff]  ;;  %v2401_v17 = vld [vmem:[#allocation11 + $0x1a0] sm:$0xff]  ;;  %v2403_v18 = vld [vmem:[#allocation11 + $0x1b0] sm:$0xff] }
 0x604   : > { %v2097_v1 = vrot.slane %v2090_v25, %v4100_v33  ;;  %v2105_v19 = vrot.slane %v3086_v26, %v4100_v33  ;;  %v2106_v20 = vcombine.low %v2012_v23, %v2019_v24  ;;  %v3087_v29 = vcombine.high %v2012_v23, %v2019_v24  ;;  %2437 = vmatprep.subr.mxu1 %v2406_v6  ;;  %v2398_v21 = vld [vmem:[#allocation11 + $0x188] sm:$0xff]  ;;  %v2400_v22 = vld [vmem:[#allocation11 + $0x198] sm:$0xff]  ;;  %v2397_v14 = vld [vmem:[#allocation11 + $0x180] sm:$0xff] }
 0x605   : > { %v2180_v48 = vcombine.low %v2163_v27, %v2171_v28  ;;  %v2179_v34 = vrot.slane %v2172_v7, %v4106_v38  ;;  %2438 = vmatpush1.msra.mxu1 %v2405_v10  ;;  %v2399_v23 = vld [vmem:[#allocation11 + $0x190] sm:$0xff]  ;;  %v2364_v0 = vld [vmem:[#allocation11 + $0x78] sm:$0xff]  ;;  %v2361_v2 = vld [vmem:[#allocation11 + $0x60] sm:$0xff] }
 0x606   : > { %v2113_v30 = vrot.slane %v2106_v20, %v4100_v33  ;;  %v2121_v31 = vrot.slane %v3087_v29, %v4100_v33  ;;  %v2122_v32 = vcombine.low %v2097_v1, %v2105_v19  ;;  %2439 = vmatprep.subr.mxu1 %v2402_v16  ;;  %v2394_v1 = vld [vmem:[#allocation11 + $0x168] sm:$0xff]  ;;  %v2396_v19 = vld [vmem:[#allocation11 + $0x178] sm:$0xff]  ;;  %v2393_v20 = vld [vmem:[#allocation11 + $0x160] sm:$0xff] }
 0x607   : > { %v2187_v35 = vrot.slane %v2180_v48, %v4106_v38  ;;  %2440 = vmatpush1.msra.mxu1 %v2401_v17  ;;  %v2395_v29 = vld [vmem:[#allocation11 + $0x170] sm:$0xff]  ;;  %v2390_v48 = vld [vmem:[#allocation11 + $0x148] sm:$0xff]  ;;  %v2360_v6 = vld [vmem:[#allocation11 + $0x58] sm:$0xff] }
 0x608   : > { %v2130_v36 = vcombine.low %v2113_v30, %v2121_v31  ;;  %v2129_v39 = vrot.slane %v2122_v32, %v4106_v38  ;;  %2441 = vmatprep.subr.mxu1 %v2398_v21  ;;  %v2392_v30 = vld [vmem:[#allocation11 + $0x158] sm:$0xff]  ;;  %v2389_v31 = vld [vmem:[#allocation11 + $0x140] sm:$0xff]  ;;  %v2391_v32 = vld [vmem:[#allocation11 + $0x150] sm:$0xff] }
 0x609   : > { %v2188_v37 = vcombine.low %v2179_v34, %v2187_v35  ;;  %v2189_v42 = vcombine.high %v2179_v34, %v2187_v35  ;;  %2442 = vmatpush1.msra.mxu1 %v2397_v14  ;;  %v2386_v34 = vld [vmem:[#allocation11 + $0x128] sm:$0xff]  ;;  %v2388_v35 = vld [vmem:[#allocation11 + $0x138] sm:$0xff]  ;;  %v2363_v3 = vld [vmem:[#allocation11 + $0x70] sm:$0xff] }
 0x60a   : > { %v2137_v40 = vrot.slane %v2130_v36, %v4106_v38  ;;  %v3090_v38 = vld [vmem:[%s4437_s6] ss:$0 sm:$0xff]  ;;  %2443 = vmatprep.subr.mxu1 %v2394_v1  ;;  %v2385_v36 = vld [vmem:[#allocation11 + $0x120] sm:$0xff]  ;;  %v2359_v10 = vld [vmem:[#allocation11 + $0x50] sm:$0xff] }
 0x60b   : > { %2444 = vmatpush1.msra.mxu1 %v2393_v20  ;;  %v2356_v16 = vld [vmem:[#allocation11 + $0x38] sm:$0xff]  ;;  %v2355_v17 = vld [vmem:[#allocation11 + $0x30] sm:$0xff] }
 0x60c   : > { %v2139_v41 = vcombine.high %v2129_v39, %v2137_v40  ;;  %v2138_v44 = vcombine.low %v2129_v39, %v2137_v40  ;;  %2445 = vmatprep.subr.mxu1 %v2390_v48  ;;  %v2382_v39 = vld [vmem:[#allocation11 + $0x108] sm:$0xff]  ;;  %v2384_v40 = vld [vmem:[#allocation11 + $0x118] sm:$0xff]  ;;  %v2351_v14 = vld [vmem:[#allocation11 + $0x10] sm:$0xff] }
 0x60d   : > { %2446 = vmatpush1.msra.mxu1 %v2389_v31  ;;  %v2352_v21 = vld [vmem:[#allocation11 + $0x18] sm:$0xff] }
 0x60e   : > { %v3448_v43 = vpack.i.bf16 %v2189_v42, %v2139_v41  ;;  %2447 = vmatprep.subr.mxu1 %v2386_v34  ;;  %v2381_v41 = vld [vmem:[#allocation11 + $0x100] sm:$0xff]  ;;  %v2383_v42 = vld [vmem:[#allocation11 + $0x110] sm:$0xff]  ;;  %v3092_v1 = vld [vmem:[%s4439_s8] ss:$0 sm:$0xff] }
 0x60f   : > { %2448 = vmatpush1.msra.mxu1 %v2385_v36  ;;  %v3093_v20 = vld [vmem:[%s4440_s9] ss:$0 sm:$0xff] }
 0x610   : > { %3449 = vrot.lane.b32.xlu1 %v3448_v43, %s3771_s25  ;;  %2449 = vmatprep.subr.mxu1 %v2382_v39  ;;  %v2380_v43 = vld [vmem:[#allocation11 + $0xf8] sm:$0xff]  ;;  %v2691_v39 = vld [vmem:[#allocation13 + $0xf0] sm:$0xff] }
 0x611   : > { %2450 = vmatpush1.msra.mxu1 %v2381_v41  ;;  %v2676_v36 = vld [vmem:[#allocation13 + $0x78] sm:$0xff]  ;;  %v2707_v41 = vld [vmem:[#allocation13 + $0x170] sm:$0xff] }
 0x682   : > { %v3450_v33 = vpop.permute.xlu1 %3449 }
 0x683   : > { %v3452_v45 = vunpack.i.h.bf16 %v3450_v33  ;;  %v3451_v46 = vunpack.i.l.bf16 %v3450_v33  ;;  %v2377_v33 = vld [vmem:[#allocation11 + $0xe0] sm:$0xff] }
 0x685   : > { %v2198_v47 = vsel %vm1576_vm0, %v2138_v44, %v3451_v46  ;;  %v2199_v50 = vsel %vm1576_vm0, %v2188_v37, %v3452_v45  ;;  %v2387_v37 = vld [vmem:[#allocation11 + $0x130] sm:$0xff]  ;;  %v2378_v44 = vld [vmem:[#allocation11 + $0xe8] sm:$0xff] }
 0x686   : > { %3326 = vmatprep.mubr.f32.mxu0 %v2198_v47  ;;  %v2379_v45 = vld [vmem:[#allocation11 + $0xf0] sm:$0xff]  ;;  %v2374_v46 = vld [vmem:[#allocation11 + $0xc8] sm:$0xff]  ;;  %v2376_v47 = vld [vmem:[#allocation11 + $0xd8] sm:$0xff]  ;;  %2451 = vmatprep.subr.mxu1 %v2378_v44 }
 0x687   : > { %3327 = vmatmul.mubr.f32.vlgmr.msra.gmra.mxu0 %v2199_v50  ;;  %v2373_v50 = vld [vmem:[#allocation11 + $0xc0] sm:$0xff]  ;;  %2452 = vmatpush1.msra.mxu1 %v2377_v33  ;;  %v2674_v44 = vld [vmem:[#allocation13 + $0x68] sm:$0xff] }
 0x688   : > { %2576 = vmatprep.mubr.f32.mxu0 %v3770_v56  ;;  %2513 = vmatpush1.msra.mxu0 %v2411_v5  ;;  %v2358_v5 = vld [vmem:[#allocation11 + $0x48] sm:$0xff]  ;;  %v2689_v33 = vld [vmem:[#allocation13 + $0xe0] sm:$0xff] }
 0x689   : > { %2514 = vmatprep.subr.mxu0 %v2408_v9  ;;  %2453 = vmatprep.subr.mxu1 %v2374_v46  ;;  %v2357_v9 = vld [vmem:[#allocation11 + $0x40] sm:$0xff] }
 0x68a   : > { %2515 = vmatpush1.msra.mxu0 %v2407_v11  ;;  %2454 = vmatpush1.msra.mxu1 %v2373_v50  ;;  %v2354_v11 = vld [vmem:[#allocation11 + $0x28] sm:$0xff]  ;;  %v2673_v46 = vld [vmem:[#allocation13 + $0x60] sm:$0xff]  ;;  %v2688_v50 = vld [vmem:[#allocation13 + $0xd8] sm:$0xff] }
 0x68b   : > { %2516 = vmatprep.subr.mxu0 %v2404_v49  ;;  %v2353_v49 = vld [vmem:[#allocation11 + $0x20] sm:$0xff] }
 0x68c   : > { %2517 = vmatpush1.msra.mxu0 %v2403_v18  ;;  %v2350_v18 = vld [vmem:[#allocation11 + $0x8] sm:$0xff] }
 0x68d   : > { %2518 = vmatprep.subr.mxu0 %v2400_v22  ;;  %v2349_v22 = vld [vmem:[#allocation11] sm:$0xff] }
 0x68e   : > { %2519 = vmatpush1.msra.mxu0 %v2399_v23 }
 0x68f   : > { %2520 = vmatprep.subr.mxu0 %v2396_v19 }
 0x690   : > { %2521 = vmatpush1.msra.mxu0 %v2395_v29 }
 0x691   : > { %2522 = vmatprep.subr.mxu0 %v2392_v30 }
 0x692   : > { %2523 = vmatpush1.msra.mxu0 %v2391_v32 }
 0x693   : > { %2524 = vmatprep.subr.mxu0 %v2388_v35  ;;  %v2724_v35 = vld [vmem:[#allocation13 + $0x1f8] sm:$0xff] }
 0x694   : > { %2525 = vmatpush1.msra.mxu0 %v2387_v37  ;;  %v2708_v37 = vld [vmem:[#allocation13 + $0x178] sm:$0xff] }
 0x695   : > { %2526 = vmatprep.subr.mxu0 %v2384_v40  ;;  %v2675_v40 = vld [vmem:[#allocation13 + $0x70] sm:$0xff] }
 0x696   : > { %2527 = vmatpush1.msra.mxu0 %v2383_v42  ;;  %v2722_v42 = vld [vmem:[#allocation13 + $0x1e8] sm:$0xff] }
 0x697   : > { %2528 = vmatprep.subr.mxu0 %v2380_v43  ;;  %v2706_v43 = vld [vmem:[#allocation13 + $0x168] sm:$0xff] }
 0x698   : > { %2529 = vmatpush1.msra.mxu0 %v2379_v45  ;;  %v2721_v45 = vld [vmem:[#allocation13 + $0x1e0] sm:$0xff] }
 0x699   : > { %2530 = vmatprep.subr.mxu0 %v2376_v47  ;;  %v2705_v47 = vld [vmem:[#allocation13 + $0x160] sm:$0xff] }
 0x747   : > { %v3328_v51 = vpop.f32.mrf.mxu0 }
 0x748   : > { %v2295_v53 = vadd.f32 %v3328_v51, %v3090_v38  ;;  %v2370_v51 = vld [vmem:[#allocation11 + $0xa8] sm:$0xff] }
 0x749   : > { %v2289_v54 = vpop.f32.mrf.mxu0  ;;  %2455 = vmatprep.subr.mxu1 %v2370_v51  ;;  %v2672_v51 = vld [vmem:[#allocation13 + $0x58] sm:$0xff] }
 0x74a   : > { %v2306_v55 = vmul.f32 %v3091_v52, %v2295_v53  ;;  %v2290_v57 = vadd.f32 %v3090_v38, %v2289_v54  ;;  %v2375_v38 = vld [vmem:[#allocation11 + $0xd0] sm:$0xff]  ;;  %v2369_v53 = vld [vmem:[#allocation11 + $0xa0] sm:$0xff] }
 0x74b   : > { %v2371_v54 = vld [vmem:[#allocation11 + $0xb0] sm:$0xff]  ;;  %2531 = vmatpush1.msra.mxu0 %v2375_v38  ;;  %2456 = vmatpush1.msra.mxu1 %v2369_v53  ;;  %v2720_v38 = vld [vmem:[#allocation13 + $0x1d8] sm:$0xff] }
 0x74c   : > { %v2305_v58 = vmul.f32 %v3091_v52, %v2290_v57  ;;  %v4300_v60 = vadd.f32 %v3493_v59, %v2306_v55  ;;  %v2372_v52 = vld [vmem:[#allocation11 + $0xb8] sm:$0xff]  ;;  %v2366_v55 = vld [vmem:[#allocation11 + $0x88] sm:$0xff]  ;;  %v2367_v59 = vld [vmem:[#allocation11 + $0x90] sm:$0xff] }
 0x74d   : > { %v2368_v57 = vld [vmem:[#allocation11 + $0x98] sm:$0xff]  ;;  %2532 = vmatprep.subr.mxu0 %v2372_v52  ;;  %2457 = vmatprep.subr.mxu1 %v2366_v55  ;;  %v2687_v53 = vld [vmem:[#allocation13 + $0xd0] sm:$0xff] }
 0x74e   : > { %2313 = vadd.xlane.f32.xlu0 %v4300_v60  ;;  %v4304_v63 = vadd.f32 %v3494_v62, %v2305_v58  ;;  %v2365_v58 = vld [vmem:[#allocation11 + $0x80] sm:$0xff]  ;;  %2533 = vmatpush1.msra.mxu0 %v2371_v54  ;;  %v2362_v62 = vld [vmem:[#allocation11 + $0x68] sm:$0xff]  ;;  %v2704_v52 = vld [vmem:[#allocation13 + $0x158] sm:$0xff] }
 0x74f   : > { %2534 = vmatprep.subr.mxu0 %v2368_v57  ;;  %2458 = vmatpush1.msra.mxu1 %v2365_v58  ;;  %v2719_v54 = vld [vmem:[#allocation13 + $0x1d0] sm:$0xff]  ;;  %v2686_v58 = vld [vmem:[#allocation13 + $0xc8] sm:$0xff] }
 0x750   : > { %2311 = vadd.xlane.f32.xlu1 %v4304_v63  ;;  %2535 = vmatpush1.msra.mxu0 %v2367_v59  ;;  %v2671_v55 = vld [vmem:[#allocation13 + $0x50] sm:$0xff]  ;;  %v2718_v59 = vld [vmem:[#allocation13 + $0x1c8] sm:$0xff] }
 0x751   : > { %2459 = vmatprep.subr.mxu1 %v2362_v62  ;;  %2536 = vmatprep.subr.mxu0 %v2364_v0  ;;  %v2703_v57 = vld [vmem:[#allocation13 + $0x150] sm:$0xff]  ;;  %v2670_v62 = vld [vmem:[#allocation13 + $0x48] sm:$0xff] }
 0x752   : > { %2460 = vmatpush1.msra.mxu1 %v2361_v2  ;;  %2537 = vmatpush1.msra.mxu0 %v2363_v3  ;;  %v2702_v0 = vld [vmem:[#allocation13 + $0x148] sm:$0xff]  ;;  %v2685_v2 = vld [vmem:[#allocation13 + $0xc0] sm:$0xff] }
 0x753   : > { %2461 = vmatprep.subr.mxu1 %v2358_v5  ;;  %2538 = vmatprep.subr.mxu0 %v2360_v6  ;;  %v2717_v3 = vld [vmem:[#allocation13 + $0x1c0] sm:$0xff] }
 0x754   : > { %2462 = vmatpush1.msra.mxu1 %v2357_v9  ;;  %2539 = vmatpush1.msra.mxu0 %v2359_v10  ;;  %v2669_v5 = vld [vmem:[#allocation13 + $0x40] sm:$0xff]  ;;  %v2684_v9 = vld [vmem:[#allocation13 + $0xb8] sm:$0xff] }
 0x755   : > { %2463 = vmatprep.subr.mxu1 %v2354_v11  ;;  %2540 = vmatprep.subr.mxu0 %v2356_v16  ;;  %v2701_v6 = vld [vmem:[#allocation13 + $0x140] sm:$0xff]  ;;  %v2716_v10 = vld [vmem:[#allocation13 + $0x1b8] sm:$0xff] }
 0x756   : > { %2464 = vmatpush1.msra.mxu1 %v2353_v49  ;;  %2541 = vmatpush1.msra.mxu0 %v2355_v17  ;;  %v2668_v11 = vld [vmem:[#allocation13 + $0x38] sm:$0xff]  ;;  %v2683_v49 = vld [vmem:[#allocation13 + $0xb0] sm:$0xff] }
 0x757   : > { %2465 = vmatprep.subr.mxu1 %v2350_v18  ;;  %2542 = vmatprep.subr.mxu0 %v2352_v21  ;;  %v2700_v16 = vld [vmem:[#allocation13 + $0x138] sm:$0xff]  ;;  %v2715_v17 = vld [vmem:[#allocation13 + $0x1b0] sm:$0xff] }
 0x758   : > { %2466 = vmatpush1.msra.mxu1 %v2349_v22  ;;  %2543 = vmatpush1.msra.mxu0 %v2351_v14  ;;  %v2667_v18 = vld [vmem:[#allocation13 + $0x30] sm:$0xff]  ;;  %v2682_v22 = vld [vmem:[#allocation13 + $0xa8] sm:$0xff] }
 0x759   : > { %3193 = vmatprep.subr.mxu0 %v2724_v35  ;;  %v2699_v21 = vld [vmem:[#allocation13 + $0x130] sm:$0xff]  ;;  %v2714_v14 = vld [vmem:[#allocation13 + $0x1a8] sm:$0xff] }
 0x75a   : > { %v2694_v35 = vld [vmem:[#allocation13 + $0x108] sm:$0xff] }
 0x7d7   : > { %v2314_v24 = vpop.xlane.xlu0 %2313 }
 0x7d8   : > { %v2316_v26 = vmul.f32 0.0078125, %v2314_v24 }
 0x7d9   : > { %v2312_v25 = vpop.xlane.xlu1 %2311 }
 0x7da   : > { %v2315_v27 = vmul.f32 0.0078125, %v2312_v25  ;;  %v4311_v7 = vsub.f32 %v4300_v60, %v2316_v26 }
 0x7dc   : > { %v4308_v28 = vsub.f32 %v4304_v63, %v2315_v27  ;;  %v2320_v8 = vmul.f32 %v4311_v7, %v4311_v7 }
 0x7de   : > { %v2319_v61 = vmul.f32 %v4308_v28, %v4308_v28 }
 0x7e0   : > { %2321 = vadd.xlane.f32.xlu0 %v2319_v61 }
 0x7e4   : > { %2323 = vadd.xlane.f32.xlu0 %v2320_v8 }
 0x869   : > { %v2322_v23 = vpop.xlane.xlu0 %2321 }
 0x86a   : > { %v2325_v24 = vmul.f32 0.0078125, %v2322_v23  ;;  %v2666_v23 = vld [vmem:[#allocation13 + $0x28] sm:$0xff] }
 0x86c   : > { %v2327_v25 = vadd.f32 1e-05, %v2325_v24  ;;  %v2698_v24 = vld [vmem:[#allocation13 + $0x128] sm:$0xff] }
 0x86d   : > { %v2324_v26 = vpop.xlane.xlu0 %2323 }
 0x86e   : > { %3473 = vrsqrt.f32 %v2327_v25  ;;  %v2326_v27 = vmul.f32 0.0078125, %v2324_v26  ;;  %v2681_v25 = vld [vmem:[#allocation13 + $0xa0] sm:$0xff] }
 0x86f   : > { %v2713_v26 = vld [vmem:[#allocation13 + $0x1a0] sm:$0xff] }
 0x870   : > { %v2328_v61 = vadd.f32 1e-05, %v2326_v27  ;;  %v2665_v27 = vld [vmem:[#allocation13 + $0x20] sm:$0xff] }
 0x872   : > { %3475 = vrsqrt.f32 %v2328_v61  ;;  %v2697_v61 = vld [vmem:[#allocation13 + $0x120] sm:$0xff] }
 0x87b   : > { %v3474_v8 = vpop.eup %3473 }
 0x87c   : > { %v2331_v19 = vmul.f32 %v3474_v8, %v4308_v28  ;;  %v2692_v28 = vld [vmem:[#allocation13 + $0xf8] sm:$0xff] }
 0x87d   : > { %3155 = vmatprep.subr.mxu1 %v2692_v28  ;;  %v2680_v8 = vld [vmem:[#allocation13 + $0x98] sm:$0xff]  ;;  %v2662_v28 = vld [vmem:[#allocation13 + $0x8] sm:$0xff] }
 0x87e   : > { %v2339_v29 = vmul.f32 %v3092_v1, %v2331_v19  ;;  %v2664_v19 = vld [vmem:[#allocation13 + $0x18] sm:$0xff] }
 0x87f   : > { %v3476_v48 = vpop.eup %3475 }
 0x880   : > { %v2347_v30 = vadd.f32 %v3093_v20, %v2339_v29  ;;  %v2332_v31 = vmul.f32 %v3476_v48, %v4311_v7  ;;  %v2723_v7 = vld [vmem:[#allocation13 + $0x1f0] sm:$0xff] }
 0x881   : > { %v2679_v29 = vld [vmem:[#allocation13 + $0x90] sm:$0xff] }
 0x882   : > { %2500 = vmatmul.mubr.f32.vlgmr.msra.gmra.mxu1 %v2347_v30  ;;  %2577 = vmatmul.mubr.f32.vlgmr.msra.gmra.mxu0 %v2347_v30  ;;  %v2340_v32 = vmul.f32 %v3092_v1, %v2332_v31  ;;  %v2712_v1 = vld [vmem:[#allocation13 + $0x198] sm:$0xff]  ;;  %v2711_v48 = vld [vmem:[#allocation13 + $0x190] sm:$0xff] }
 0x883   : > { %2505 = vmatprep.mubr.f32.mxu1 %v3770_v56  ;;  %2582 = vmatprep.mubr.f32.mxu0 %v3770_v56  ;;  %v2690_v56 = vld [vmem:[#allocation13 + $0xe8] sm:$0xff]  ;;  %v2663_v30 = vld [vmem:[#allocation13 + $0x10] sm:$0xff] }
 0x884   : > { %v2348_v34 = vadd.f32 %v3093_v20, %v2340_v32  ;;  %3156 = vmatpush3.msra.mxu1 %v2676_v36  ;;  %3194 = vmatpush3.msra.mxu0 %v2708_v37  ;;  %v2696_v20 = vld [vmem:[#allocation13 + $0x118] sm:$0xff]  ;;  %v2695_v31 = vld [vmem:[#allocation13 + $0x110] sm:$0xff]  ;;  %v2678_v32 = vld [vmem:[#allocation13 + $0x88] sm:$0xff] }
 0x885   : > { %3157 = vmatprep.subr.mxu1 %v2691_v39  ;;  %3195 = vmatprep.subr.mxu0 %v2723_v7  ;;  %v2677_v36 = vld [vmem:[#allocation13 + $0x80] sm:$0xff] }
 0x886   : > { %2506 = vmatmul.mubr.f32.gmra.mxu1 %v2348_v34  ;;  %2583 = vmatmul.mubr.f32.gmra.mxu0 %v2348_v34  ;;  %v2710_v34 = vld [vmem:[#allocation13 + $0x188] sm:$0xff]  ;;  %v2709_v37 = vld [vmem:[#allocation13 + $0x180] sm:$0xff] }
 0x887   : > { %3158 = vmatpush3.msra.mxu1 %v2675_v40  ;;  %3196 = vmatpush3.msra.mxu0 %v2707_v41  ;;  %v2661_v39 = vld [vmem:[#allocation13] sm:$0xff]  ;;  %v2413_v40 = vld [vmem:[%s4442_s11] sm:$0xf]  ;;  %v2429_v41 = vsub.s32 3, %v4079_v12 }
 0x888   : > { %3159 = vmatprep.subr.mxu1 %v2690_v56  ;;  %3197 = vmatprep.subr.mxu0 %v2722_v42  ;;  %v2693_v7 = vld [vmem:[#allocation13 + $0x100] sm:$0xff]  ;;  %v2418_v56 = vrot.slane %v2413_v40, %v691_v15  ;;  %v2426_v42 = vrot.slane %v2413_v40, %v699_v4 }
 0x889   : > { %3160 = vmatpush3.msra.mxu1 %v2674_v44  ;;  %3198 = vmatpush3.msra.mxu0 %v2706_v43 }
 0x88a   : > { %3161 = vmatprep.subr.mxu1 %v2689_v33  ;;  %3199 = vmatprep.subr.mxu0 %v2721_v45  ;;  %v2422_v33 = vrot.slane %v2413_v40, %v695_v13  ;;  %v2430_v45 = vrot.slane %v2413_v40, %v2429_v41 }
 0x88b   : > { %3162 = vmatpush3.msra.mxu1 %v2673_v46  ;;  %3200 = vmatpush3.msra.mxu0 %v2705_v47 }
 0x88c   : > { %3163 = vmatprep.subr.mxu1 %v2688_v50  ;;  %3201 = vmatprep.subr.mxu0 %v2720_v38 }
 0x88d   : > { %3164 = vmatpush3.msra.mxu1 %v2672_v51  ;;  %3202 = vmatpush3.msra.mxu0 %v2704_v52 }
 0x88e   : > { %3165 = vmatprep.subr.mxu1 %v2687_v53  ;;  %3203 = vmatprep.subr.mxu0 %v2719_v54 }
 0x88f   : > { %3166 = vmatpush3.msra.mxu1 %v2671_v55  ;;  %3204 = vmatpush3.msra.mxu0 %v2703_v57 }
 0x890   : > { %3167 = vmatprep.subr.mxu1 %v2686_v58  ;;  %3205 = vmatprep.subr.mxu0 %v2718_v59 }
 0x891   : > { %3168 = vmatpush3.msra.mxu1 %v2670_v62  ;;  %3206 = vmatpush3.msra.mxu0 %v2702_v0 }
 0x892   : > { %3169 = vmatprep.subr.mxu1 %v2685_v2  ;;  %3207 = vmatprep.subr.mxu0 %v2717_v3 }
 0x893   : > { %3170 = vmatpush3.msra.mxu1 %v2669_v5  ;;  %3208 = vmatpush3.msra.mxu0 %v2701_v6 }
 0x894   : > { %3171 = vmatprep.subr.mxu1 %v2684_v9  ;;  %3209 = vmatprep.subr.mxu0 %v2716_v10 }
 0x895   : > { %3172 = vmatpush3.msra.mxu1 %v2668_v11  ;;  %3210 = vmatpush3.msra.mxu0 %v2700_v16 }
 0x896   : > { %3173 = vmatprep.subr.mxu1 %v2683_v49  ;;  %3211 = vmatprep.subr.mxu0 %v2715_v17 }
 0x897   : > { %3174 = vmatpush3.msra.mxu1 %v2667_v18  ;;  %3212 = vmatpush3.msra.mxu0 %v2699_v21 }
 0x898   : > { %3175 = vmatprep.subr.mxu1 %v2682_v22  ;;  %3213 = vmatprep.subr.mxu0 %v2714_v14 }
 0x899   : > { %3176 = vmatpush3.msra.mxu1 %v2666_v23  ;;  %3214 = vmatpush3.msra.mxu0 %v2698_v24 }
 0x89a   : > { %3177 = vmatprep.subr.mxu1 %v2681_v25  ;;  %3215 = vmatprep.subr.mxu0 %v2713_v26 }
 0x89b   : > { %3178 = vmatpush3.msra.mxu1 %v2665_v27  ;;  %3216 = vmatpush3.msra.mxu0 %v2697_v61 }
 0x89c   : > { %3179 = vmatprep.subr.mxu1 %v2680_v8  ;;  %3217 = vmatprep.subr.mxu0 %v2712_v1 }
 0x89d   : > { %3180 = vmatpush3.msra.mxu1 %v2664_v19  ;;  %3218 = vmatpush3.msra.mxu0 %v2696_v20 }
 0x89e   : > { %3181 = vmatprep.subr.mxu1 %v2679_v29  ;;  %3219 = vmatprep.subr.mxu0 %v2711_v48 }
 0x89f   : > { %3182 = vmatpush3.msra.mxu1 %v2663_v30  ;;  %3220 = vmatpush3.msra.mxu0 %v2695_v31 }
 0x8a0   : > { %3183 = vmatprep.subr.mxu1 %v2678_v32  ;;  %3221 = vmatprep.subr.mxu0 %v2710_v34 }
 0x8a1   : > { %3184 = vmatpush3.msra.mxu1 %v2662_v28  ;;  %3222 = vmatpush3.msra.mxu0 %v2694_v35 }
 0x8a2   : > { %3185 = vmatprep.subr.mxu1 %v2677_v36  ;;  %3223 = vmatprep.subr.mxu0 %v2709_v37 }
 0x8a3   : > { %3186 = vmatpush3.msra.mxu1 %v2661_v39  ;;  %3224 = vmatpush3.msra.mxu0 %v2693_v7 }
 0x942   : > { %v2501_v44 = vpop.f32.mrf.mxu1  ;;  %v2578_v43 = vpop.f32.mrf.mxu0 }
 0x943   : > { %v4337_v46 = vadd.f32 %v2501_v44, %v2418_v56  ;;  %v4339_v47 = vadd.f32 %v2578_v43, %v2426_v42 }
 0x944   : > { %v2503_v50 = vpop.f32.mrf.mxu1  ;;  %v2580_v38 = vpop.f32.mrf.mxu0 }
 0x945   : > { %v2597_v51 = vmul.f32 0.044715, %v4337_v46  ;;  %v2599_v52 = vmul.f32 0.044715, %v4339_v47  ;;  %v2504_v15 = vadd.f32 %v2503_v50, %v2422_v33  ;;  %v4343_v53 = vadd.f32 %v2580_v38, %v2430_v45 }
 0x946   : > { %v2507_v4 = vpop.f32.mrf.mxu1  ;;  %v2584_v54 = vpop.f32.mrf.mxu0  ;;  %v2589_v50 = vmul.f32 0.5, %v4337_v46 }
 0x947   : > { %v2605_v55 = vmul.f32 %v2597_v51, %v4337_v46  ;;  %v2607_v12 = vmul.f32 %v2599_v52, %v4339_v47  ;;  %v4347_v13 = vadd.f32 %v2507_v4, %v2418_v56  ;;  %v4349_v57 = vadd.f32 %v2584_v54, %v2426_v42 }
 0x948   : > { %v2598_v58 = vmul.f32 0.044715, %v2504_v15  ;;  %v2600_v59 = vmul.f32 0.044715, %v4343_v53  ;;  %v2509_v62 = vpop.f32.mrf.mxu1  ;;  %v2586_v0 = vpop.f32.mrf.mxu0  ;;  %v2590_v43 = vmul.f32 0.5, %v2504_v15  ;;  %v2592_v38 = vmul.f32 0.5, %v4343_v53 }
 0x949   : > { %v2613_v2 = vmul.f32 %v2605_v55, %v4337_v46  ;;  %v2615_v3 = vmul.f32 %v2607_v12, %v4339_v47  ;;  %v2601_v5 = vmul.f32 0.044715, %v4347_v13  ;;  %v2603_v6 = vmul.f32 0.044715, %v4349_v57 }
 0x94a   : > { %v2606_v9 = vmul.f32 %v2598_v58, %v2504_v15  ;;  %v2608_v10 = vmul.f32 %v2600_v59, %v4343_v53  ;;  %v2510_v11 = vadd.f32 %v2509_v62, %v2422_v33  ;;  %v2587_v16 = vadd.f32 %v2586_v0, %v2430_v45 }
 0x94b   : > { %v2621_v49 = vadd.f32 %v2613_v2, %v4337_v46  ;;  %v2623_v17 = vadd.f32 %v2615_v3, %v4339_v47  ;;  %v2609_v18 = vmul.f32 %v2601_v5, %v4347_v13  ;;  %v2611_v26 = vmul.f32 %v2603_v6, %v4349_v57 }
 0x94c   : > { %v2602_v21 = vmul.f32 0.044715, %v2510_v11  ;;  %v2604_v22 = vmul.f32 0.044715, %v2587_v16  ;;  %v2614_v14 = vmul.f32 %v2606_v9, %v2504_v15  ;;  %v2616_v23 = vmul.f32 %v2608_v10, %v4343_v53 }
 0x94d   : > { %v2629_v24 = vmul.f32 0.7978846, %v2621_v49  ;;  %v2631_v25 = vmul.f32 0.7978846, %v2623_v17  ;;  %v2617_v19 = vmul.f32 %v2609_v18, %v4347_v13  ;;  %v2619_v32 = vmul.f32 %v2611_v26, %v4349_v57 }
 0x94e   : > { %v2610_v27 = vmul.f32 %v2602_v21, %v2510_v11  ;;  %v2612_v61 = vmul.f32 %v2604_v22, %v2587_v16  ;;  %v2622_v8 = vadd.f32 %v2614_v14, %v2504_v15  ;;  %v2624_v1 = vadd.f32 %v2616_v23, %v4343_v53 }
 0x94f   : > { %3477 = vtanh.f32 %v2629_v24  ;;  %v2625_v31 = vadd.f32 %v2617_v19, %v4347_v13  ;;  %v2627_v36 = vadd.f32 %v2619_v32, %v4349_v57  ;;  %v2591_v4 = vmul.f32 0.5, %v4339_v47 }
 0x950   : > { %3479 = vtanh.f32 %v2631_v25  ;;  %v2630_v20 = vmul.f32 0.7978846, %v2622_v8  ;;  %v2632_v29 = vmul.f32 0.7978846, %v2624_v1  ;;  %v2618_v48 = vmul.f32 %v2610_v27, %v2510_v11  ;;  %v3095_v25 = vld [vmem:[%s4488_s17] ss:$0 sm:$0xff] }
 0x951   : > { %v2620_v30 = vmul.f32 %v2612_v61, %v2587_v16  ;;  %v2633_v35 = vmul.f32 0.7978846, %v2625_v31  ;;  %v2635_v7 = vmul.f32 0.7978846, %v2627_v36  ;;  %v2594_v2 = vmul.f32 0.5, %v2510_v11 }
 0x952   : > { %3481 = vtanh.f32 %v2630_v20  ;;  %v2626_v34 = vadd.f32 %v2618_v48, %v2510_v11  ;;  %v2596_v46 = vmul.f32 0.5, %v2587_v16  ;;  %v2593_v53 = vmul.f32 0.5, %v4347_v13 }
 0x953   : > { %3483 = vtanh.f32 %v2632_v29  ;;  %v2628_v28 = vadd.f32 %v2620_v30, %v2587_v16  ;;  %v2595_v47 = vmul.f32 0.5, %v4349_v57  ;;  %v3094_v16 = vld [vmem:[%s4444_s13] ss:$0 sm:$0xff] }
 0x954   : > { %v2634_v37 = vmul.f32 0.7978846, %v2626_v34  ;;  %3485 = vtanh.f32 %v2633_v35 }
 0x955   : > { %v2636_v39 = vmul.f32 0.7978846, %v2628_v28 }
 0x956   : > { %3487 = vtanh.f32 %v2634_v37 }
 0x957   : > { %3489 = vtanh.f32 %v2636_v39 }
 0x958   : > { %3491 = vtanh.f32 %v2635_v7 }
 0x95c   : > { %v3478_v40 = vpop.eup %3477 }
 0x95d   : > { %v3480_v41 = vpop.eup %3479  ;;  %v2645_v42 = vadd.f32 1.0, %v3478_v40 }
 0x95e   : > { %v2647_v45 = vadd.f32 1.0, %v3480_v41 }
 0x95f   : > { %v3482_v56 = vpop.eup %3481  ;;  %v2653_v58 = vmul.f32 %v2645_v42, %v2589_v50 }
 0x960   : > { %v3484_v44 = vpop.eup %3483  ;;  %v2646_v33 = vadd.f32 1.0, %v3482_v56  ;;  %v2655_v0 = vmul.f32 %v2647_v45, %v2591_v4 }
 0x961   : > { %v2648_v51 = vadd.f32 1.0, %v3484_v44  ;;  %v3486_v52 = vpop.eup %3485 }
 0x962   : > { %v2654_v54 = vmul.f32 %v2646_v33, %v2590_v43  ;;  %v2649_v59 = vadd.f32 1.0, %v3486_v52 }
 0x963   : > { %v3488_v55 = vpop.eup %3487  ;;  %v2656_v12 = vmul.f32 %v2648_v51, %v2592_v38 }
 0x964   : > { %v3490_v62 = vpop.eup %3489  ;;  %2796 = vmatprep.mubr.f32.mxu1 %v2654_v54  ;;  %v2650_v15 = vadd.f32 1.0, %v3488_v55  ;;  %v2657_v49 = vmul.f32 %v2649_v59, %v2593_v53 }
 0x965   : > { %v3492_v3 = vpop.eup %3491  ;;  %2871 = vmatprep.mubr.f32.mxu0 %v2656_v12  ;;  %2797 = vmatmul.mubr.f32.vlgmr.msra.gmra.mxu1 %v2653_v58  ;;  %v2652_v5 = vadd.f32 1.0, %v3490_v62 }
 0x966   : > { %2872 = vmatmul.mubr.f32.vlgmr.msra.gmra.mxu0 %v2655_v0  ;;  %v2658_v6 = vmul.f32 %v2650_v15, %v2594_v2  ;;  %v2651_v9 = vadd.f32 1.0, %v3492_v3 }
 0x967   : > { %v2660_v10 = vmul.f32 %v2652_v5, %v2596_v46 }
 0x968   : > { %2801 = vmatprep.mubr.f32.mxu1 %v2658_v6  ;;  %v2659_v17 = vmul.f32 %v2651_v9, %v2595_v47 }
 0x969   : > { %2876 = vmatprep.mubr.f32.mxu0 %v2660_v10  ;;  %2802 = vmatmul.mubr.f32.gmra.mxu1 %v2657_v49 }
 0x96a   : > { %2877 = vmatmul.mubr.f32.gmra.mxu0 %v2659_v17 }
 0xa25   : > { %v3187_v11 = vpop.f32.mrf.mxu1 }
 0xa26   : > { %v3225_v18 = vpop.f32.mrf.mxu0 }
 0xa27   : > { %v3188_v21 = vpop.f32.mrf.mxu1 }
 0xa28   : > { %v3189_v13 = vadd.f32 %v3188_v21, %v3187_v11  ;;  %v3226_v22 = vpop.f32.mrf.mxu0 }
 0xa29   : > { %v3190_v14 = vpop.f32.mrf.mxu1  ;;  %v3227_v23 = vadd.f32 %v3226_v22, %v3225_v18 }
 0xa2a   : > { %v2799_v57 = vadd.f32 %v3189_v13, %v3094_v16  ;;  %v3228_v24 = vpop.f32.mrf.mxu0 }
 0xa2b   : > { %v3191_v26 = vpop.f32.mrf.mxu1 }
 0xa2c   : > { %v2874_v27 = vadd.f32 %v3227_v23, %v2799_v57  ;;  %v3192_v61 = vadd.f32 %v3191_v26, %v3190_v14  ;;  %v3229_v8 = vpop.f32.mrf.mxu0 }
 0xa2d   : > { %v3230_v20 = vadd.f32 %v3229_v8, %v3228_v24 }
 0xa2e   : > { %v2889_v1 = vmul.f32 %v3095_v25, %v2874_v27  ;;  %v2804_v19 = vadd.f32 %v3192_v61, %v3094_v16 }
 0xa30   : > { %v2891_v29 = vadd.f32 %v2889_v1, %v4304_v63  ;;  %v2879_v48 = vadd.f32 %v3230_v20, %v2804_v19 }
 0xa32   : > { %2893 = vst [vmem:[%s595_s28] sm:$0xff] %v2891_v29  ;;  %v2890_v30 = vmul.f32 %v3095_v25, %v2879_v48 }
 0xa34   : > { %v2892_v31 = vadd.f32 %v2890_v30, %v4300_v60 }
 0xa36   : > { %2894 = vst [vmem:[%s595_s28 + $0x8] sm:$0xff] %v2892_v31 }
 0xa37   : > { %3692 = shalt.err (!%p3689_p6)
}
 0xa38   : > { %s3693_s25 = scalar_lea.hbm %s4385_s30, 256  ;;  %s3697_s28 = scalar_lea.hbm %s4489_s1, 512 }
 0xa39   : > { %p3694_p4 = scmp.ne.s32.totalorder %s4385_s30, %s3693_s25  ;;  %p3698_p9 = scmp.lt.s32.totalorder %s4385_s30, %s4489_s1 }
 0xa3a   : > { %p3699_p11 = scmp.lt.s32.totalorder %s3697_s28, %s3693_s25 }
 0xa3b   : > { %p3695_p0 = pnand %p3694_p4, %p4490_p13 }
 0xa3c   : > { %p3700_p10 = por %p3699_p11, %p3698_p9 }
 0xa3d   : > { %p3696_p2 = pneg %p3695_p0 }
 0xa3f   : > { %p3701_p12 = pnand %p3700_p10, %p3696_p2 }
 0xa41   : > { %3704 = shalt.err (!%p3701_p12)
}
 0xa42   : > { %s3775_s12 = smov 128   ;;  %s3776_s23 = smov 8  }
 0xa43   : > { %3355 = dma.vmem_to_hbm [thread:$0]  (%p4490_p13), %s4387_s27, 256, %s4385_s30, %s2896_s5, %s3775_s12, %s3775_s12, %s3776_s23  }
 0xa44 PF: > { %s2924_s24 = sand.u32 1, %s3743_s18   ;;  %p4491_p1 = scmp.ne.s32.totalorder %s4476_s14, 0 }
 0xa45   : > { %p4492_p3 = scmp.ge.s32.totalorder %s3755_s21, 2  ;;  %s2925_s2 = scalar_lea.sflag [#allocation4], %s2924_s24 }
 0xa47   : > { %p3381_p5 = pnand %p4492_p3, %p4491_p1 }
 0xa49   : > { %p3382_p8 = pneg %p3381_p5 }
 0xa4b   : > { %3738 = dma.done.wait (%p3382_p8), %s2925_s2, 256  }
 0xa4c   : > { %3740 = vsyncadd (%p3382_p8), %s2925_s2, 4294967040  ;;  %s4493_s10 = sld [smem:[#allocation20_spill]]  ;;  %p31_p7 = scmp.ge.s32.totalorder %s3966_s16, 4  }
 0xa4d   : > { %s4494_s18 = smov %s3747_s19  ;;  %s4495_s19 = smov %s3751_s20 }
 0xa4e   : > { %s4497_s21 = smov %s3966_s16  ;;  %33 = sbr.rel (!%p31_p7) target bundleno = 17 (0x11), region = 149 }
 0xa52   : > { %s4496_s20 = smov %s4493_s10 }
 0xa53   :  { %2930 = vsyncpa [#allocation3], 1 }
 0xa54   :  { %2932 = vsyncpa [#allocation3 + $0x1], 1 }
 0xa55   :  { %2933 = vsyncpa [#allocation6], 1 }
 0xa56   :  { %2934 = vsyncpa [#allocation9], 1 }
 0xa57   :  { %2935 = vsyncpa [#allocation12], 1 }
 0xa58   :  { %2936 = vsyncpa [#allocation4], 1 }
 0xa59   :  { %2938 = vsyncpa [#allocation4 + $0x1], 1 }

</bundles_post_ra>
